<compile_context>
chip_gen: v7x
topology: tpu7x:2x2x1
jax: 0.10.0
libtpu: 0.0.40
codegen_flags: <defaults>
</compile_context>

<pallas_src>
import jax
import jax.numpy as jnp
from jax.experimental import pallas as pl
from jax.experimental.pallas import tpu as pltpu


LANE = 128
SUB = 8


# ------------------------------------------------------------------
# helpers
# ------------------------------------------------------------------
def _round_up(x, m):
    return ((x + m - 1) // m) * m


def _pad2(x, rows, cols, value=0.0):
    return jnp.pad(x, ((0, rows - x.shape[0]), (0, cols - x.shape[1])),
                   constant_values=value)


def _pick_row_tile(n_p):
    for tm in (512, 256, 128):
        if tm <= n_p and n_p % tm == 0:
            return tm
    return n_p


# ------------------------------------------------------------------
# Fused forward kernel over grid = (phase, A-row-tile):
#   phase 0: x1[tile] = relu(A[tile] @ (X @ Wc1) + bc1); accumulate readout 1
#   phase 1: x2[tile] = relu(A[tile] @ (x1 @ Wc2) + bc2); accumulate readout 2
#   last step: r = relu(readout1) + relu(readout2); MLP head; log_softmax
# ------------------------------------------------------------------
def fused_gnn_kernel(a_ref, x_ref, mmean_ref, negt_ref,
                     wc1_ref, wc2_ref, w1_ref, w2_ref, w3_ref, bias_ref,
                     o_ref,
                     xw_s, x1_s, gmax1, gmean1, gmax2, gmean2):
    p = pl.program_id(0)                 # 0: GCN layer 1, 1: GCN layer 2
    j = pl.program_id(1)                 # A row-tile index
    nj = pl.num_programs(1)

    tm = a_ref.shape[0]
    h_p = wc1_ref.shape[1]
    nhid_p = w2_ref.shape[0]
    nhalf_p = w2_ref.shape[1]
    c_p = w3_ref.shape[1]
    gp = gmax1.shape[0]
    f32, bf16 = jnp.float32, jnp.bfloat16

    bias = bias_ref[...]                 # [8, Wmax] packed f32 bias slab

    # ---- phase setup (first row tile of each phase) -------------------------
    @pl.when((p == 0) & (j == 0))
    def _init():
        gmax1[...] = jnp.full_like(gmax1, -1e30)
        gmax2[...] = jnp.full_like(gmax2, -1e30)
        gmean1[...] = jnp.zeros_like(gmean1)
        gmean2[...] = jnp.zeros_like(gmean2)
        # XW for layer 1: stays resident in VMEM for every A row tile.
        xw_s[...] = jnp.dot(x_ref[...], wc1_ref[...],
                            preferred_element_type=f32).astype(bf16)

    @pl.when((p == 1) & (j == 0))
    def _xw_layer2():
        # XW for layer 2, from the x1 rows produced in phase 0.
        xw_s[...] = jnp.dot(x1_s[...], wc2_ref[...],
                            preferred_element_type=f32).astype(bf16)

    # ---- GCN row tile: y = relu(A[tile] @ XW + b) ---------------------------
    b_gcn = jnp.where(p == 0, bias[0:1, :h_p], bias[1:2, :h_p])
    y = jnp.dot(a_ref[...], xw_s[...], preferred_element_type=f32)
    y = jnp.maximum(y + b_gcn, 0.0)                       # [tm, h_p] f32
    y_bf = y.astype(bf16)

    # ---- per-graph readout contributions of this tile -----------------------
    # mean pool: one small MXU matmul with the pre-scaled mask tile
    gmean_tile = jnp.dot(mmean_ref[...].astype(bf16), y_bf,
                         preferred_element_type=f32)      # [gp, h_p]
    # max pool: static loop over graphs; [tm,1] lane broadcast per graph, so the
    # peak intermediate is tm*h_p (no [G, N, H] materialization).
    negt = negt_ref[...]                                  # [tm, gp] f32
    rows = []
    for g in range(gp):
        rows.append(jnp.max(y + negt[:, g:g + 1], axis=0, keepdims=True))
    gmax_tile = jnp.concatenate(rows, axis=0)             # [gp, h_p]

    @pl.when(p == 0)
    def _phase0_updates():
        row0 = pl.multiple_of(j * tm, tm)
        x1_s[pl.ds(row0, tm), :] = y_bf                   # keep x1 for layer 2
        gmax1[...] = jnp.maximum(gmax1[...], gmax_tile)
        gmean1[...] = gmean1[...] + gmean_tile

    @pl.when(p == 1)
    def _phase1_updates():
        gmax2[...] = jnp.maximum(gmax2[...], gmax_tile)
        gmean2[...] = gmean2[...] + gmean_tile

    # ---- MLP head + log_softmax at the very last grid step ------------------
    @pl.when((p == 1) & (j == nj - 1))
    def _head():
        # relu(readout1) + relu(readout2); empty/padded graph max (-1e30) -> 0
        rmax = jnp.maximum(gmax1[...], 0.0) + jnp.maximum(gmax2[...], 0.0)
        rmean = jnp.maximum(gmean1[...], 0.0) + jnp.maximum(gmean2[...], 0.0)
        # lin1 with the weight split into max / mean halves (no concat needed)
        h1 = jnp.dot(rmax.astype(bf16), w1_ref[0:h_p, :],
                     preferred_element_type=f32)
        h1 = h1 + jnp.dot(rmean.astype(bf16), w1_ref[h_p:2 * h_p, :],
                          preferred_element_type=f32)
        h1 = jnp.maximum(h1 + bias[2:3, :nhid_p], 0.0)
        h2 = jnp.dot(h1.astype(bf16), w2_ref[...], preferred_element_type=f32)
        h2 = jnp.maximum(h2 + bias[3:4, :nhalf_p], 0.0)
        z = jnp.dot(h2.astype(bf16), w3_ref[...], preferred_element_type=f32)
        z = z + bias[4:5, :c_p]          # padded classes carry -1e30 -> vanish
        z = z - jnp.max(z, axis=-1, keepdims=True)
        o_ref[...] = z - jnp.log(jnp.sum(jnp.exp(z), axis=-1, keepdims=True))


# ------------------------------------------------------------------
# Wrapper: pad to lane-dense shapes, run the single fused pallas_call
# ------------------------------------------------------------------
def model_forward(x, a_norm, mask, counts, params):
    """Forward pass of `Model` (eval mode, save_flag=False, num_layers=2)."""
    n, f = x.shape
    g = mask.shape[0]
    h = params["w_conv1"].shape[1]
    nhid = params["w_lin1"].shape[1]
    nhalf = params["w_lin2"].shape[1]
    ncls = params["w_lin3"].shape[1]

    n_p = _round_up(n, LANE)            # N appears in both lane/sublane dims of A
    f_p = _round_up(f, LANE)
    g_p = _round_up(g, SUB)
    h_p = _round_up(h, LANE)
    nhid_p = _round_up(nhid, LANE)
    nhalf_p = _round_up(nhalf, LANE)
    c_p = _round_up(ncls, LANE)
    tm = _pick_row_tile(n_p)

    # bf16 MXU operands (f32 accumulation in-kernel)
    a_pad = _pad2(a_norm, n_p, n_p).astype(jnp.bfloat16)
    x_pad = _pad2(x, n_p, f_p).astype(jnp.bfloat16)
    wc1 = _pad2(params["w_conv1"], f_p, h_p).astype(jnp.bfloat16)
    wc2 = _pad2(params["w_conv2"], h_p, h_p).astype(jnp.bfloat16)
    w1 = jnp.concatenate(
        [_pad2(params["w_lin1"][:h, :], h_p, nhid_p),     # applies to max pool
         _pad2(params["w_lin1"][h:, :], h_p, nhid_p)],    # applies to mean pool
        axis=0).astype(jnp.bfloat16)
    w2 = _pad2(params["w_lin2"], nhid_p, nhalf_p).astype(jnp.bfloat16)
    w3 = _pad2(params["w_lin3"], nhalf_p, c_p).astype(jnp.bfloat16)

    # readout operators (f32; mask math stays f32 in-kernel)
    inv_counts = 1.0 / jnp.maximum(counts, 1.0)           # guard empty graphs
    mmean = _pad2(mask * inv_counts, g_p, n_p)            # [Gp, Np] mean pool
    negt = _pad2(((mask - 1.0) * 1e30).T, n_p, g_p,
                 value=-1e30)                             # [Np, Gp] max mask

    # all five biases packed into one f32 slab -> one DMA instead of five
    wmax = max(h_p, nhid_p, nhalf_p, c_p)
    bias = jnp.zeros((SUB, wmax), jnp.float32)
    bias = bias.at[0, :h].set(params["b_conv1"][0])
    bias = bias.at[1, :h].set(params["b_conv2"][0])
    bias = bias.at[2, :nhid].set(params["b_lin1"][0])
    bias = bias.at[3, :nhalf].set(params["b_lin2"][0])
    bias = bias.at[4, ncls:c_p].set(-1e30)                # kill padded classes
    bias = bias.at[4, :ncls].set(params["b_lin3"][0])

    grid = (2, n_p // tm)                                 # (layer phase, row tile)
    const = lambda p, j: (0, 0)
    in_specs = [
        pl.BlockSpec((tm, n_p), lambda p, j: (j, 0)),     # A row tile (streamed)
        pl.BlockSpec((n_p, f_p), const),                  # X        (resident)
        pl.BlockSpec((g_p, tm), lambda p, j: (0, j)),     # mean-pool mask tile
        pl.BlockSpec((tm, g_p), lambda p, j: (j, 0)),     # max-pool mask tile
        pl.BlockSpec((f_p, h_p), const),                  # Wc1
        pl.BlockSpec((h_p, h_p), const),                  # Wc2
        pl.BlockSpec((2 * h_p, nhid_p), const),           # W1 (stacked halves)
        pl.BlockSpec((nhid_p, nhalf_p), const),           # W2
        pl.BlockSpec((nhalf_p, c_p), const),              # W3
        pl.BlockSpec((SUB, wmax), const),                 # packed biases
    ]
    out_spec = pl.BlockSpec((g_p, c_p), const)
    scratch = [
        pltpu.VMEM((n_p, h_p), jnp.bfloat16),             # XW of current layer
        pltpu.VMEM((n_p, h_p), jnp.bfloat16),             # x1 activations
        pltpu.VMEM((g_p, h_p), jnp.float32),              # gmax1
        pltpu.VMEM((g_p, h_p), jnp.float32),              # gmean1
        pltpu.VMEM((g_p, h_p), jnp.float32),              # gmax2
        pltpu.VMEM((g_p, h_p), jnp.float32),              # gmean2
    ]

    # rough VMEM estimate (double-buffered streamed inputs + resident operands +
    # scratch) used to raise the scoped-VMEM limit when shapes grow; kept under
    # v7x physical VMEM (64 MiB).
    bf16_elems = (2 * tm * n_p + n_p * f_p + wc1.size + wc2.size + w1.size
                  + w2.size + w3.size + 2 * n_p * h_p)
    f32_elems = (2 * (g_p * tm + tm * g_p) + bias.size + 4 * g_p * h_p
                 + g_p * c_p)
    est_bytes = 2 * bf16_elems + 4 * f32_elems
    vmem_limit = int(min(max(32 * 1024 * 1024, 2 * est_bytes),
                         56 * 1024 * 1024))

    out = pl.pallas_call(
        fused_gnn_kernel,
        out_shape=jax.ShapeDtypeStruct((g_p, c_p), jnp.float32),
        grid_spec=pltpu.PrefetchScalarGridSpec(
            num_scalar_prefetch=0,
            grid=grid,
            in_specs=in_specs,
            out_specs=out_spec,
            scratch_shapes=scratch),
        compiler_params=pltpu.CompilerParams(
            # Both axes are sequential: layer 2 consumes all of layer 1's rows
            # and the readouts accumulate across row tiles.
            # TODO(synk): an outer batch-of-graph-batches axis would be the
            # natural "parallel" (megacore) axis on v7x.
            dimension_semantics=("arbitrary", "arbitrary"),
            vmem_limit_bytes=vmem_limit),
    )(a_pad, x_pad, mmean, negt, wc1, wc2, w1, w2, w3, bias)

    logp = out[:g, :ncls]
    graph_list = []            # save_flag = False -> graph_visualize never runs
    ori_edge_attr_list = []
    return logp, graph_list, ori_edge_attr_list


# ------------------------------------------------------------------
# Glue: adjacency normalization, params, pure-JAX reference
# ------------------------------------------------------------------
def build_norm_adj(edge_index, num_nodes):
    a = jnp.zeros((num_nodes, num_nodes), jnp.float32)
    a = a.at[edge_index[1], edge_index[0]].set(1.0)      # message src -> dst
    a = a + jnp.eye(num_nodes, dtype=jnp.float32)        # add self loops
    deg = jnp.sum(a, axis=1)
    dinv = 1.0 / jnp.sqrt(jnp.maximum(deg, 1.0))
    return dinv[:, None] * a * dinv[None, :]


def init_params(key, num_features, nhid, num_classes):
    ks = jax.random.split(key, 10)

    def dense(k, fan_in, fan_out):
        scale = 1.0 / jnp.sqrt(jnp.float32(fan_in))
        return jax.random.normal(k, (fan_in, fan_out), jnp.float32) * scale

    return {
        "w_conv1": dense(ks[0], num_features, nhid),
        "b_conv1": jnp.zeros((1, nhid), jnp.float32),
        "w_conv2": dense(ks[1], nhid, nhid),
        "b_conv2": jnp.zeros((1, nhid), jnp.float32),
        "w_lin1": dense(ks[2], nhid * 2, nhid),
        "b_lin1": jax.random.normal(ks[3], (1, nhid), jnp.float32) * 0.01,
        "w_lin2": dense(ks[4], nhid, nhid // 2),
        "b_lin2": jax.random.normal(ks[5], (1, nhid // 2), jnp.float32) * 0.01,
        "w_lin3": dense(ks[6], nhid // 2, num_classes),
        "b_lin3": jax.random.normal(ks[7], (1, num_classes), jnp.float32) * 0.01,
    }


def reference_forward(x, a_norm, mask, counts, params, bf16_dots=False):
    """Pure-JAX reference. With bf16_dots=True it mirrors the kernel's
    bf16-operand / f32-accumulation matmuls for a tight numerical check."""
    def dot(a, b):
        if bf16_dots:
            a = a.astype(jnp.bfloat16)
            b = b.astype(jnp.bfloat16)
        return jnp.dot(a, b, preferred_element_type=jnp.float32)

    inv_counts = 1.0 / jnp.maximum(counts, 1.0)

    def gcn(xin, w, b):
        return jnp.maximum(dot(a_norm, dot(xin, w)) + b, 0.0)

    def readout(xh):
        masked = jnp.where(mask[:, :, None] > 0.0, xh[None, :, :], -jnp.inf)
        gmax = jnp.max(masked, axis=1)
        gmean = dot(mask * inv_counts, xh)
        return jnp.concatenate([gmax, gmean], axis=1)

    x1 = gcn(x, params["w_conv1"], params["b_conv1"])
    xcat0 = readout(x1)
    x2 = gcn(x1, params["w_conv2"], params["b_conv2"])
    xcat1 = readout(x2)
    xx = jnp.maximum(xcat0, 0.0) + jnp.maximum(xcat1, 0.0)
    h1 = jnp.maximum(dot(xx, params["w_lin1"]) + params["b_lin1"], 0.0)
    h2 = jnp.maximum(dot(h1, params["w_lin2"]) + params["b_lin2"], 0.0)
    z = dot(h2, params["w_lin3"]) + params["b_lin3"]
    return jax.nn.log_softmax(z, axis=-1)


if __name__ == "__main__":
    key = jax.random.PRNGKey(0)
    k_x, k_p = jax.random.split(key)

    # small synthetic graph batch: 2 graphs x 8 nodes each
    num_graphs, nodes_per_graph = 2, 8
    num_nodes = num_graphs * nodes_per_graph
    num_features, nhid, num_classes = 8, 32, 4

    x = jax.random.normal(k_x, (num_nodes, num_features), jnp.float32)

    # undirected ring inside each graph
    src, dst = [], []
    for gi in range(num_graphs):
        off = gi * nodes_per_graph
        for i in range(nodes_per_graph):
            nxt = (i + 1) % nodes_per_graph
            src += [off + i, off + nxt]
            dst += [off + nxt, off + i]
    edge_index = jnp.array([src, dst], dtype=jnp.int32)
    batch = jnp.repeat(jnp.arange(num_graphs, dtype=jnp.int32), nodes_per_graph)

    a_norm = build_norm_adj(edge_index, num_nodes)
    mask = (batch[None, :] == jnp.arange(num_graphs)[:, None]).astype(jnp.float32)
    counts = jnp.sum(mask, axis=1, keepdims=True)

    params = init_params(k_p, num_features, nhid, num_classes)

    logp, graph_list, ori_edge_attr_list = model_forward(
        x, a_norm, mask, counts, params)
    jax.block_until_ready(logp)

    assert logp.shape == (num_graphs, num_classes)
    assert bool(jnp.all(jnp.isfinite(logp)))
    # rows of log_softmax must exp-sum to 1
    assert bool(jnp.allclose(jnp.sum(jnp.exp(logp), axis=-1), 1.0, atol=1e-3))

    # tight check vs a reference that mirrors the kernel's bf16 MXU operands
    ref_bf16 = reference_forward(x, a_norm, mask, counts, params, bf16_dots=True)
    assert bool(jnp.allclose(logp, ref_bf16, atol=1e-2, rtol=1e-2))
    # loose check vs the full-f32 reference (difference = bf16 operand rounding)
    ref_f32 = reference_forward(x, a_norm, mask, counts, params, bf16_dots=False)
    assert bool(jnp.allclose(logp, ref_f32, atol=5e-2, rtol=5e-2))
    print("KERNEL_OK")
</pallas_src>

<mosaic_0001>
module attributes {stable_mosaic.version = 11 : i64} {
  func.func @fused_gnn_kernel(%arg0: i32, %arg1: i32, %arg2: memref<128x128xbf16, #tpu.memory_space<vmem>>, %arg3: memref<128x128xbf16, #tpu.memory_space<vmem>>, %arg4: memref<8x128xf32, #tpu.memory_space<vmem>>, %arg5: memref<128x8xf32, #tpu.memory_space<vmem>>, %arg6: memref<128x128xbf16, #tpu.memory_space<vmem>>, %arg7: memref<128x128xbf16, #tpu.memory_space<vmem>>, %arg8: memref<256x128xbf16, #tpu.memory_space<vmem>>, %arg9: memref<128x128xbf16, #tpu.memory_space<vmem>>, %arg10: memref<128x128xbf16, #tpu.memory_space<vmem>>, %arg11: memref<8x128xf32, #tpu.memory_space<vmem>>, %arg12: memref<8x128xf32, #tpu.memory_space<vmem>>, %arg13: memref<128x128xbf16, #tpu.memory_space<vmem>>, %arg14: memref<128x128xbf16, #tpu.memory_space<vmem>>, %arg15: memref<8x128xf32, #tpu.memory_space<vmem>>, %arg16: memref<8x128xf32, #tpu.memory_space<vmem>>, %arg17: memref<8x128xf32, #tpu.memory_space<vmem>>, %arg18: memref<8x128xf32, #tpu.memory_space<vmem>>) attributes {dimension_semantics = [#tpu.dimension_semantics<arbitrary>, #tpu.dimension_semantics<arbitrary>], iteration_bounds = array<i64: 2, 1>, scalar_prefetch = 0 : i64, scratch_operands = 6 : i64, tpu.core_type = #tpu.core_type<tc>, window_params = [{transform_indices = @transform_0, window_bounds = array<i64: 128, 128>}, {pipeline_mode = #tpu.pipeline_mode<synchronous>, transform_indices = @transform_1, window_bounds = array<i64: 128, 128>}, {transform_indices = @transform_2, window_bounds = array<i64: 8, 128>}, {transform_indices = @transform_3, window_bounds = array<i64: 128, 8>}, {pipeline_mode = #tpu.pipeline_mode<synchronous>, transform_indices = @transform_4, window_bounds = array<i64: 128, 128>}, {pipeline_mode = #tpu.pipeline_mode<synchronous>, transform_indices = @transform_5, window_bounds = array<i64: 128, 128>}, {pipeline_mode = #tpu.pipeline_mode<synchronous>, transform_indices = @transform_6, window_bounds = array<i64: 256, 128>}, {pipeline_mode = #tpu.pipeline_mode<synchronous>, transform_indices = @transform_7, window_bounds = array<i64: 128, 128>}, {pipeline_mode = #tpu.pipeline_mode<synchronous>, transform_indices = @transform_8, window_bounds = array<i64: 128, 128>}, {pipeline_mode = #tpu.pipeline_mode<synchronous>, transform_indices = @transform_9, window_bounds = array<i64: 8, 128>}, {pipeline_mode = #tpu.pipeline_mode<synchronous>, transform_indices = @transform_10, window_bounds = array<i64: 8, 128>}]} {
    %c0 = arith.constant 0 : index
    %c0_0 = arith.constant 0 : index
    %0 = vector.load %arg11[%c0, %c0_0] : memref<8x128xf32, #tpu.memory_space<vmem>>, vector<8x128xf32>
    %c0_i32 = arith.constant 0 : i32
    %1 = arith.cmpi eq, %arg0, %c0_i32 : i32
    %c0_i32_1 = arith.constant 0 : i32
    %2 = arith.cmpi eq, %arg1, %c0_i32_1 : i32
    %3 = arith.andi %1, %2 : i1
    %4 = arith.extui %3 : i1 to i32
    %c0_i32_2 = arith.constant 0 : i32
    %5 = arith.cmpi ne, %4, %c0_i32_2 : i32
    scf.if %5 {
      %cst_31 = arith.constant -1.000000e+30 : f32
      %79 = vector.broadcast %cst_31 : f32 to vector<8x128xf32>
      %c0_32 = arith.constant 0 : index
      %c0_33 = arith.constant 0 : index
      %80 = vector.load %arg15[%c0_32, %c0_33] : memref<8x128xf32, #tpu.memory_space<vmem>>, vector<8x128xf32>
      tpu.vector_store %arg15[%c0_32, %c0_33], %79 {strides = array<i32>} : memref<8x128xf32, #tpu.memory_space<vmem>>, vector<8x128xf32>,
      %cst_34 = arith.constant -1.000000e+30 : f32
      %81 = vector.broadcast %cst_34 : f32 to vector<8x128xf32>
      %c0_35 = arith.constant 0 : index
      %c0_36 = arith.constant 0 : index
      %82 = vector.load %arg17[%c0_35, %c0_36] : memref<8x128xf32, #tpu.memory_space<vmem>>, vector<8x128xf32>
      tpu.vector_store %arg17[%c0_35, %c0_36], %81 {strides = array<i32>} : memref<8x128xf32, #tpu.memory_space<vmem>>, vector<8x128xf32>,
      %cst_37 = arith.constant 0.000000e+00 : f32
      %83 = vector.broadcast %cst_37 : f32 to vector<8x128xf32>
      %c0_38 = arith.constant 0 : index
      %c0_39 = arith.constant 0 : index
      %84 = vector.load %arg16[%c0_38, %c0_39] : memref<8x128xf32, #tpu.memory_space<vmem>>, vector<8x128xf32>
      tpu.vector_store %arg16[%c0_38, %c0_39], %83 {strides = array<i32>} : memref<8x128xf32, #tpu.memory_space<vmem>>, vector<8x128xf32>,
      %cst_40 = arith.constant 0.000000e+00 : f32
      %85 = vector.broadcast %cst_40 : f32 to vector<8x128xf32>
      %c0_41 = arith.constant 0 : index
      %c0_42 = arith.constant 0 : index
      %86 = vector.load %arg18[%c0_41, %c0_42] : memref<8x128xf32, #tpu.memory_space<vmem>>, vector<8x128xf32>
      tpu.vector_store %arg18[%c0_41, %c0_42], %85 {strides = array<i32>} : memref<8x128xf32, #tpu.memory_space<vmem>>, vector<8x128xf32>,
      %c0_43 = arith.constant 0 : index
      %c0_44 = arith.constant 0 : index
      %87 = vector.load %arg3[%c0_43, %c0_44] : memref<128x128xbf16, #tpu.memory_space<vmem>>, vector<128x128xbf16>
      %c0_45 = arith.constant 0 : index
      %c0_46 = arith.constant 0 : index
      %88 = vector.load %arg6[%c0_45, %c0_46] : memref<128x128xbf16, #tpu.memory_space<vmem>>, vector<128x128xbf16>
      %cst_47 = arith.constant dense<0.000000e+00> : vector<128x128xf32>
      %89 = tpu.matmul %87, %88, %cst_47 {dimension_numbers = #tpu.dot_dimension_numbers<[1], [0], [0], [1], [0, 0, 1, 1], [], []>} : vector<128x128xbf16>, vector<128x128xbf16>, vector<128x128xf32> -> vector<128x128xf32>
      %90 = arith.truncf %89 : vector<128x128xf32> to vector<128x128xbf16>
      %c0_48 = arith.constant 0 : index
      %c0_49 = arith.constant 0 : index
      %91 = vector.load %arg13[%c0_48, %c0_49] : memref<128x128xbf16, #tpu.memory_space<vmem>>, vector<128x128xbf16>
      tpu.vector_store %arg13[%c0_48, %c0_49], %90 {strides = array<i32>} : memref<128x128xbf16, #tpu.memory_space<vmem>>, vector<128x128xbf16>,
    } else {
    }
    %c1_i32 = arith.constant 1 : i32
    %6 = arith.cmpi eq, %arg0, %c1_i32 : i32
    %c0_i32_3 = arith.constant 0 : i32
    %7 = arith.cmpi eq, %arg1, %c0_i32_3 : i32
    %8 = arith.andi %6, %7 : i1
    %9 = arith.extui %8 : i1 to i32
    %c0_i32_4 = arith.constant 0 : i32
    %10 = arith.cmpi ne, %9, %c0_i32_4 : i32
    scf.if %10 {
      %c0_31 = arith.constant 0 : index
      %c0_32 = arith.constant 0 : index
      %79 = vector.load %arg14[%c0_31, %c0_32] : memref<128x128xbf16, #tpu.memory_space<vmem>>, vector<128x128xbf16>
      %c0_33 = arith.constant 0 : index
      %c0_34 = arith.constant 0 : index
      %80 = vector.load %arg7[%c0_33, %c0_34] : memref<128x128xbf16, #tpu.memory_space<vmem>>, vector<128x128xbf16>
      %cst_35 = arith.constant dense<0.000000e+00> : vector<128x128xf32>
      %81 = tpu.matmul %79, %80, %cst_35 {dimension_numbers = #tpu.dot_dimension_numbers<[1], [0], [0], [1], [0, 0, 1, 1], [], []>} : vector<128x128xbf16>, vector<128x128xbf16>, vector<128x128xf32> -> vector<128x128xf32>
      %82 = arith.truncf %81 : vector<128x128xf32> to vector<128x128xbf16>
      %c0_36 = arith.constant 0 : index
      %c0_37 = arith.constant 0 : index
      %83 = vector.load %arg13[%c0_36, %c0_37] : memref<128x128xbf16, #tpu.memory_space<vmem>>, vector<128x128xbf16>
      tpu.vector_store %arg13[%c0_36, %c0_37], %82 {strides = array<i32>} : memref<128x128xbf16, #tpu.memory_space<vmem>>, vector<128x128xbf16>,
    } else {
    }
    %c0_i32_5 = arith.constant 0 : i32
    %11 = arith.cmpi eq, %arg0, %c0_i32_5 : i32
    %12 = vector.extract_strided_slice %0 {offsets = [0, 0], sizes = [1, 128], strides = [1, 1]} : vector<8x128xf32> to vector<1x128xf32>
    %13 = vector.extract_strided_slice %0 {offsets = [1, 0], sizes = [1, 128], strides = [1, 1]} : vector<8x128xf32> to vector<1x128xf32>
    %14 = arith.select %11, %12, %13 : vector<1x128xf32>
    %c0_6 = arith.constant 0 : index
    %c0_7 = arith.constant 0 : index
    %15 = vector.load %arg2[%c0_6, %c0_7] : memref<128x128xbf16, #tpu.memory_space<vmem>>, vector<128x128xbf16>
    %c0_8 = arith.constant 0 : index
    %c0_9 = arith.constant 0 : index
    %16 = vector.load %arg13[%c0_8, %c0_9] : memref<128x128xbf16, #tpu.memory_space<vmem>>, vector<128x128xbf16>
    %cst = arith.constant dense<0.000000e+00> : vector<128x128xf32>
    %17 = tpu.matmul %15, %16, %cst {dimension_numbers = #tpu.dot_dimension_numbers<[1], [0], [0], [1], [0, 0, 1, 1], [], []>} : vector<128x128xbf16>, vector<128x128xbf16>, vector<128x128xf32> -> vector<128x128xf32>
    %18 = vector.broadcast %14 : vector<1x128xf32> to vector<128x128xf32>
    %19 = arith.addf %17, %18 : vector<128x128xf32>
    %cst_10 = arith.constant 0.000000e+00 : f32
    %20 = vector.broadcast %cst_10 : f32 to vector<128x128xf32>
    %21 = arith.maximumf %19, %20 : vector<128x128xf32>
    %22 = arith.truncf %21 : vector<128x128xf32> to vector<128x128xbf16>
    %c0_11 = arith.constant 0 : index
    %c0_12 = arith.constant 0 : index
    %23 = vector.load %arg4[%c0_11, %c0_12] : memref<8x128xf32, #tpu.memory_space<vmem>>, vector<8x128xf32>
    %24 = arith.truncf %23 : vector<8x128xf32> to vector<8x128xbf16>
    %cst_13 = arith.constant dense<0.000000e+00> : vector<8x128xf32>
    %25 = tpu.matmul %24, %22, %cst_13 {dimension_numbers = #tpu.dot_dimension_numbers<[1], [0], [0], [1], [0, 0, 1, 1], [], []>} : vector<8x128xbf16>, vector<128x128xbf16>, vector<8x128xf32> -> vector<8x128xf32>
    %c0_14 = arith.constant 0 : index
    %c0_15 = arith.constant 0 : index
    %26 = vector.load %arg5[%c0_14, %c0_15] : memref<128x8xf32, #tpu.memory_space<vmem>>, vector<128x8xf32>
    %27 = vector.extract_strided_slice %26 {offsets = [0, 0], sizes = [128, 1], strides = [1, 1]} : vector<128x8xf32> to vector<128x1xf32>
    %28 = vector.broadcast %27 : vector<128x1xf32> to vector<128x128xf32>
    %29 = arith.addf %21, %28 : vector<128x128xf32>
    %cst_16 = arith.constant dense<0xFF800000> : vector<128xf32>
    %30 = vector.multi_reduction <maximumf>, %29, %cst_16 [0] : vector<128x128xf32> to vector<128xf32>
    %31 = vector.shape_cast %30 : vector<128xf32> to vector<1x128xf32>
    %32 = vector.extract_strided_slice %26 {offsets = [0, 1], sizes = [128, 1], strides = [1, 1]} : vector<128x8xf32> to vector<128x1xf32>
    %33 = vector.broadcast %32 : vector<128x1xf32> to vector<128x128xf32>
    %34 = arith.addf %21, %33 : vector<128x128xf32>
    %cst_17 = arith.constant dense<0xFF800000> : vector<128xf32>
    %35 = vector.multi_reduction <maximumf>, %34, %cst_17 [0] : vector<128x128xf32> to vector<128xf32>
    %36 = vector.shape_cast %35 : vector<128xf32> to vector<1x128xf32>
    %37 = vector.extract_strided_slice %26 {offsets = [0, 2], sizes = [128, 1], strides = [1, 1]} : vector<128x8xf32> to vector<128x1xf32>
    %38 = vector.broadcast %37 : vector<128x1xf32> to vector<128x128xf32>
    %39 = arith.addf %21, %38 : vector<128x128xf32>
    %cst_18 = arith.constant dense<0xFF800000> : vector<128xf32>
    %40 = vector.multi_reduction <maximumf>, %39, %cst_18 [0] : vector<128x128xf32> to vector<128xf32>
    %41 = vector.shape_cast %40 : vector<128xf32> to vector<1x128xf32>
    %42 = vector.extract_strided_slice %26 {offsets = [0, 3], sizes = [128, 1], strides = [1, 1]} : vector<128x8xf32> to vector<128x1xf32>
    %43 = vector.broadcast %42 : vector<128x1xf32> to vector<128x128xf32>
    %44 = arith.addf %21, %43 : vector<128x128xf32>
    %cst_19 = arith.constant dense<0xFF800000> : vector<128xf32>
    %45 = vector.multi_reduction <maximumf>, %44, %cst_19 [0] : vector<128x128xf32> to vector<128xf32>
    %46 = vector.shape_cast %45 : vector<128xf32> to vector<1x128xf32>
    %47 = vector.extract_strided_slice %26 {offsets = [0, 4], sizes = [128, 1], strides = [1, 1]} : vector<128x8xf32> to vector<128x1xf32>
    %48 = vector.broadcast %47 : vector<128x1xf32> to vector<128x128xf32>
    %49 = arith.addf %21, %48 : vector<128x128xf32>
    %cst_20 = arith.constant dense<0xFF800000> : vector<128xf32>
    %50 = vector.multi_reduction <maximumf>, %49, %cst_20 [0] : vector<128x128xf32> to vector<128xf32>
    %51 = vector.shape_cast %50 : vector<128xf32> to vector<1x128xf32>
    %52 = vector.extract_strided_slice %26 {offsets = [0, 5], sizes = [128, 1], strides = [1, 1]} : vector<128x8xf32> to vector<128x1xf32>
    %53 = vector.broadcast %52 : vector<128x1xf32> to vector<128x128xf32>
    %54 = arith.addf %21, %53 : vector<128x128xf32>
    %cst_21 = arith.constant dense<0xFF800000> : vector<128xf32>
    %55 = vector.multi_reduction <maximumf>, %54, %cst_21 [0] : vector<128x128xf32> to vector<128xf32>
    %56 = vector.shape_cast %55 : vector<128xf32> to vector<1x128xf32>
    %57 = vector.extract_strided_slice %26 {offsets = [0, 6], sizes = [128, 1], strides = [1, 1]} : vector<128x8xf32> to vector<128x1xf32>
    %58 = vector.broadcast %57 : vector<128x1xf32> to vector<128x128xf32>
    %59 = arith.addf %21, %58 : vector<128x128xf32>
    %cst_22 = arith.constant dense<0xFF800000> : vector<128xf32>
    %60 = vector.multi_reduction <maximumf>, %59, %cst_22 [0] : vector<128x128xf32> to vector<128xf32>
    %61 = vector.shape_cast %60 : vector<128xf32> to vector<1x128xf32>
    %62 = vector.extract_strided_slice %26 {offsets = [0, 7], sizes = [128, 1], strides = [1, 1]} : vector<128x8xf32> to vector<128x1xf32>
    %63 = vector.broadcast %62 : vector<128x1xf32> to vector<128x128xf32>
    %64 = arith.addf %21, %63 : vector<128x128xf32>
    %cst_23 = arith.constant dense<0xFF800000> : vector<128xf32>
    %65 = vector.multi_reduction <maximumf>, %64, %cst_23 [0] : vector<128x128xf32> to vector<128xf32>
    %66 = vector.shape_cast %65 : vector<128xf32> to vector<1x128xf32>
    %67 = tpu.concatenate %31, %36, %41, %46, %51, %56, %61, %66 in 0 : vector<1x128xf32>, vector<1x128xf32>, vector<1x128xf32>, vector<1x128xf32>, vector<1x128xf32>, vector<1x128xf32>, vector<1x128xf32>, vector<1x128xf32> -> vector<8x128xf32>
    %c0_i32_24 = arith.constant 0 : i32
    %68 = arith.cmpi eq, %arg0, %c0_i32_24 : i32
    %69 = arith.extui %68 : i1 to i32
    %c0_i32_25 = arith.constant 0 : i32
    %70 = arith.cmpi ne, %69, %c0_i32_25 : i32
    scf.if %70 {
      %c128_i32 = arith.constant 128 : i32
      %79 = arith.muli %arg1, %c128_i32 : i32
      %80 = tpu.assume_multiple %79, 128 : i32
      %81 = arith.index_cast %80 : i32 to index
      %c0_31 = arith.constant 0 : index
      %82 = vector.load %arg14[%81, %c0_31] : memref<128x128xbf16, #tpu.memory_space<vmem>>, vector<128x128xbf16>
      tpu.vector_store %arg14[%81, %c0_31], %22 {strides = array<i32>} : memref<128x128xbf16, #tpu.memory_space<vmem>>, vector<128x128xbf16>,
      %c0_32 = arith.constant 0 : index
      %c0_33 = arith.constant 0 : index
      %83 = vector.load %arg15[%c0_32, %c0_33] : memref<8x128xf32, #tpu.memory_space<vmem>>, vector<8x128xf32>
      %84 = arith.maximumf %83, %67 : vector<8x128xf32>
      %c0_34 = arith.constant 0 : index
      %c0_35 = arith.constant 0 : index
      %85 = vector.load %arg15[%c0_34, %c0_35] : memref<8x128xf32, #tpu.memory_space<vmem>>, vector<8x128xf32>
      tpu.vector_store %arg15[%c0_34, %c0_35], %84 {strides = array<i32>} : memref<8x128xf32, #tpu.memory_space<vmem>>, vector<8x128xf32>,
      %c0_36 = arith.constant 0 : index
      %c0_37 = arith.constant 0 : index
      %86 = vector.load %arg16[%c0_36, %c0_37] : memref<8x128xf32, #tpu.memory_space<vmem>>, vector<8x128xf32>
      %87 = arith.addf %86, %25 : vector<8x128xf32>
      %c0_38 = arith.constant 0 : index
      %c0_39 = arith.constant 0 : index
      %88 = vector.load %arg16[%c0_38, %c0_39] : memref<8x128xf32, #tpu.memory_space<vmem>>, vector<8x128xf32>
      tpu.vector_store %arg16[%c0_38, %c0_39], %87 {strides = array<i32>} : memref<8x128xf32, #tpu.memory_space<vmem>>, vector<8x128xf32>,
    } else {
    }
    %c1_i32_26 = arith.constant 1 : i32
    %71 = arith.cmpi eq, %arg0, %c1_i32_26 : i32
    %72 = arith.extui %71 : i1 to i32
    %c0_i32_27 = arith.constant 0 : i32
    %73 = arith.cmpi ne, %72, %c0_i32_27 : i32
    scf.if %73 {
      %c0_31 = arith.constant 0 : index
      %c0_32 = arith.constant 0 : index
      %79 = vector.load %arg17[%c0_31, %c0_32] : memref<8x128xf32, #tpu.memory_space<vmem>>, vector<8x128xf32>
      %80 = arith.maximumf %79, %67 : vector<8x128xf32>
      %c0_33 = arith.constant 0 : index
      %c0_34 = arith.constant 0 : index
      %81 = vector.load %arg17[%c0_33, %c0_34] : memref<8x128xf32, #tpu.memory_space<vmem>>, vector<8x128xf32>
      tpu.vector_store %arg17[%c0_33, %c0_34], %80 {strides = array<i32>} : memref<8x128xf32, #tpu.memory_space<vmem>>, vector<8x128xf32>,
      %c0_35 = arith.constant 0 : index
      %c0_36 = arith.constant 0 : index
      %82 = vector.load %arg18[%c0_35, %c0_36] : memref<8x128xf32, #tpu.memory_space<vmem>>, vector<8x128xf32>
      %83 = arith.addf %82, %25 : vector<8x128xf32>
      %c0_37 = arith.constant 0 : index
      %c0_38 = arith.constant 0 : index
      %84 = vector.load %arg18[%c0_37, %c0_38] : memref<8x128xf32, #tpu.memory_space<vmem>>, vector<8x128xf32>
      tpu.vector_store %arg18[%c0_37, %c0_38], %83 {strides = array<i32>} : memref<8x128xf32, #tpu.memory_space<vmem>>, vector<8x128xf32>,
    } else {
    }
    %c1_i32_28 = arith.constant 1 : i32
    %74 = arith.cmpi eq, %arg0, %c1_i32_28 : i32
    %c0_i32_29 = arith.constant 0 : i32
    %75 = arith.cmpi eq, %arg1, %c0_i32_29 : i32
    %76 = arith.andi %74, %75 : i1
    %77 = arith.extui %76 : i1 to i32
    %c0_i32_30 = arith.constant 0 : i32
    %78 = arith.cmpi ne, %77, %c0_i32_30 : i32
    scf.if %78 {
      %c0_31 = arith.constant 0 : index
      %c0_32 = arith.constant 0 : index
      %79 = vector.load %arg15[%c0_31, %c0_32] : memref<8x128xf32, #tpu.memory_space<vmem>>, vector<8x128xf32>
      %cst_33 = arith.constant 0.000000e+00 : f32
      %80 = vector.broadcast %cst_33 : f32 to vector<8x128xf32>
      %81 = arith.maximumf %79, %80 : vector<8x128xf32>
      %c0_34 = arith.constant 0 : index
      %c0_35 = arith.constant 0 : index
      %82 = vector.load %arg17[%c0_34, %c0_35] : memref<8x128xf32, #tpu.memory_space<vmem>>, vector<8x128xf32>
      %cst_36 = arith.constant 0.000000e+00 : f32
      %83 = vector.broadcast %cst_36 : f32 to vector<8x128xf32>
      %84 = arith.maximumf %82, %83 : vector<8x128xf32>
      %85 = arith.addf %81, %84 : vector<8x128xf32>
      %c0_37 = arith.constant 0 : index
      %c0_38 = arith.constant 0 : index
      %86 = vector.load %arg16[%c0_37, %c0_38] : memref<8x128xf32, #tpu.memory_space<vmem>>, vector<8x128xf32>
      %cst_39 = arith.constant 0.000000e+00 : f32
      %87 = vector.broadcast %cst_39 : f32 to vector<8x128xf32>
      %88 = arith.maximumf %86, %87 : vector<8x128xf32>
      %c0_40 = arith.constant 0 : index
      %c0_41 = arith.constant 0 : index
      %89 = vector.load %arg18[%c0_40, %c0_41] : memref<8x128xf32, #tpu.memory_space<vmem>>, vector<8x128xf32>
      %cst_42 = arith.constant 0.000000e+00 : f32
      %90 = vector.broadcast %cst_42 : f32 to vector<8x128xf32>
      %91 = arith.maximumf %89, %90 : vector<8x128xf32>
      %92 = arith.addf %88, %91 : vector<8x128xf32>
      %93 = arith.truncf %85 : vector<8x128xf32> to vector<8x128xbf16>
      %c0_43 = arith.constant 0 : index
      %c0_44 = arith.constant 0 : index
      %94 = vector.load %arg8[%c0_43, %c0_44] : memref<256x128xbf16, #tpu.memory_space<vmem>>, vector<128x128xbf16>
      %cst_45 = arith.constant dense<0.000000e+00> : vector<8x128xf32>
      %95 = tpu.matmul %93, %94, %cst_45 {dimension_numbers = #tpu.dot_dimension_numbers<[1], [0], [0], [1], [0, 0, 1, 1], [], []>} : vector<8x128xbf16>, vector<128x128xbf16>, vector<8x128xf32> -> vector<8x128xf32>
      %96 = arith.truncf %92 : vector<8x128xf32> to vector<8x128xbf16>
      %c128 = arith.constant 128 : index
      %c0_46 = arith.constant 0 : index
      %97 = vector.load %arg8[%c128, %c0_46] : memref<256x128xbf16, #tpu.memory_space<vmem>>, vector<128x128xbf16>
      %cst_47 = arith.constant dense<0.000000e+00> : vector<8x128xf32>
      %98 = tpu.matmul %96, %97, %cst_47 {dimension_numbers = #tpu.dot_dimension_numbers<[1], [0], [0], [1], [0, 0, 1, 1], [], []>} : vector<8x128xbf16>, vector<128x128xbf16>, vector<8x128xf32> -> vector<8x128xf32>
      %99 = arith.addf %95, %98 : vector<8x128xf32>
      %100 = vector.extract_strided_slice %0 {offsets = [2, 0], sizes = [1, 128], strides = [1, 1]} : vector<8x128xf32> to vector<1x128xf32>
      %101 = vector.broadcast %100 : vector<1x128xf32> to vector<8x128xf32>
      %102 = arith.addf %99, %101 : vector<8x128xf32>
      %cst_48 = arith.constant 0.000000e+00 : f32
      %103 = vector.broadcast %cst_48 : f32 to vector<8x128xf32>
      %104 = arith.maximumf %102, %103 : vector<8x128xf32>
      %105 = arith.truncf %104 : vector<8x128xf32> to vector<8x128xbf16>
      %c0_49 = arith.constant 0 : index
      %c0_50 = arith.constant 0 : index
      %106 = vector.load %arg9[%c0_49, %c0_50] : memref<128x128xbf16, #tpu.memory_space<vmem>>, vector<128x128xbf16>
      %cst_51 = arith.constant dense<0.000000e+00> : vector<8x128xf32>
      %107 = tpu.matmul %105, %106, %cst_51 {dimension_numbers = #tpu.dot_dimension_numbers<[1], [0], [0], [1], [0, 0, 1, 1], [], []>} : vector<8x128xbf16>, vector<128x128xbf16>, vector<8x128xf32> -> vector<8x128xf32>
      %108 = vector.extract_strided_slice %0 {offsets = [3, 0], sizes = [1, 128], strides = [1, 1]} : vector<8x128xf32> to vector<1x128xf32>
      %109 = vector.broadcast %108 : vector<1x128xf32> to vector<8x128xf32>
      %110 = arith.addf %107, %109 : vector<8x128xf32>
      %cst_52 = arith.constant 0.000000e+00 : f32
      %111 = vector.broadcast %cst_52 : f32 to vector<8x128xf32>
      %112 = arith.maximumf %110, %111 : vector<8x128xf32>
      %113 = arith.truncf %112 : vector<8x128xf32> to vector<8x128xbf16>
      %c0_53 = arith.constant 0 : index
      %c0_54 = arith.constant 0 : index
      %114 = vector.load %arg10[%c0_53, %c0_54] : memref<128x128xbf16, #tpu.memory_space<vmem>>, vector<128x128xbf16>
      %cst_55 = arith.constant dense<0.000000e+00> : vector<8x128xf32>
      %115 = tpu.matmul %113, %114, %cst_55 {dimension_numbers = #tpu.dot_dimension_numbers<[1], [0], [0], [1], [0, 0, 1, 1], [], []>} : vector<8x128xbf16>, vector<128x128xbf16>, vector<8x128xf32> -> vector<8x128xf32>
      %116 = vector.extract_strided_slice %0 {offsets = [4, 0], sizes = [1, 128], strides = [1, 1]} : vector<8x128xf32> to vector<1x128xf32>
      %117 = vector.broadcast %116 : vector<1x128xf32> to vector<8x128xf32>
      %118 = arith.addf %115, %117 : vector<8x128xf32>
      %cst_56 = arith.constant dense<0xFF800000> : vector<8xf32>
      %119 = vector.multi_reduction <maximumf>, %118, %cst_56 [1] : vector<8x128xf32> to vector<8xf32>
      %120 = vector.shape_cast %119 : vector<8xf32> to vector<8x1xf32>
      %121 = vector.broadcast %120 : vector<8x1xf32> to vector<8x128xf32>
      %122 = arith.subf %118, %121 : vector<8x128xf32>
      %123 = math.exp %122 : vector<8x128xf32>
      %cst_57 = arith.constant dense<0.000000e+00> : vector<8xf32>
      %124 = vector.multi_reduction <add>, %123, %cst_57 [1] : vector<8x128xf32> to vector<8xf32>
      %125 = vector.shape_cast %124 : vector<8xf32> to vector<8x1xf32>
      %126 = math.log %125 : vector<8x1xf32>
      %127 = vector.broadcast %126 : vector<8x1xf32> to vector<8x128xf32>
      %128 = arith.subf %122, %127 : vector<8x128xf32>
      %c0_58 = arith.constant 0 : index
      %c0_59 = arith.constant 0 : index
      %129 = vector.load %arg12[%c0_58, %c0_59] : memref<8x128xf32, #tpu.memory_space<vmem>>, vector<8x128xf32>
      tpu.vector_store %arg12[%c0_58, %c0_59], %128 {strides = array<i32>} : memref<8x128xf32, #tpu.memory_space<vmem>>, vector<8x128xf32>,
    } else {
    }
    return
  }
  func.func @transform_0(%arg0: i32, %arg1: i32) -> (i32, i32) {
    %c0_i32 = arith.constant 0 : i32
    %c0_i32_0 = arith.constant 0 : i32
    return %arg1, %c0_i32 : i32, i32
  }
  func.func @transform_1(%arg0: i32, %arg1: i32) -> (i32, i32) {
    %c0_i32 = arith.constant 0 : i32
    %c0_i32_0 = arith.constant 0 : i32
    %c0_i32_1 = arith.constant 0 : i32
    return %c0_i32, %c0_i32_0 : i32, i32
  }
  func.func @transform_2(%arg0: i32, %arg1: i32) -> (i32, i32) {
    %c0_i32 = arith.constant 0 : i32
    %c0_i32_0 = arith.constant 0 : i32
    return %c0_i32, %arg1 : i32, i32
  }
  func.func @transform_3(%arg0: i32, %arg1: i32) -> (i32, i32) {
    %c0_i32 = arith.constant 0 : i32
    %c0_i32_0 = arith.constant 0 : i32
    return %arg1, %c0_i32 : i32, i32
  }
  func.func @transform_4(%arg0: i32, %arg1: i32) -> (i32, i32) {
    %c0_i32 = arith.constant 0 : i32
    %c0_i32_0 = arith.constant 0 : i32
    %c0_i32_1 = arith.constant 0 : i32
    return %c0_i32, %c0_i32_0 : i32, i32
  }
  func.func @transform_5(%arg0: i32, %arg1: i32) -> (i32, i32) {
    %c0_i32 = arith.constant 0 : i32
    %c0_i32_0 = arith.constant 0 : i32
    %c0_i32_1 = arith.constant 0 : i32
    return %c0_i32, %c0_i32_0 : i32, i32
  }
  func.func @transform_6(%arg0: i32, %arg1: i32) -> (i32, i32) {
    %c0_i32 = arith.constant 0 : i32
    %c0_i32_0 = arith.constant 0 : i32
    %c0_i32_1 = arith.constant 0 : i32
    return %c0_i32, %c0_i32_0 : i32, i32
  }
  func.func @transform_7(%arg0: i32, %arg1: i32) -> (i32, i32) {
    %c0_i32 = arith.constant 0 : i32
    %c0_i32_0 = arith.constant 0 : i32
    %c0_i32_1 = arith.constant 0 : i32
    return %c0_i32, %c0_i32_0 : i32, i32
  }
  func.func @transform_8(%arg0: i32, %arg1: i32) -> (i32, i32) {
    %c0_i32 = arith.constant 0 : i32
    %c0_i32_0 = arith.constant 0 : i32
    %c0_i32_1 = arith.constant 0 : i32
    return %c0_i32, %c0_i32_0 : i32, i32
  }
  func.func @transform_9(%arg0: i32, %arg1: i32) -> (i32, i32) {
    %c0_i32 = arith.constant 0 : i32
    %c0_i32_0 = arith.constant 0 : i32
    %c0_i32_1 = arith.constant 0 : i32
    return %c0_i32, %c0_i32_0 : i32, i32
  }
  func.func @transform_10(%arg0: i32, %arg1: i32) -> (i32, i32) {
    %c0_i32 = arith.constant 0 : i32
    %c0_i32_0 = arith.constant 0 : i32
    %c0_i32_1 = arith.constant 0 : i32
    return %c0_i32, %c0_i32_0 : i32, i32
  }
}

</mosaic_0001>

<bundles_post_ra>
// kernel: tpu_custom_call.1
= control target key start
LH: loop header
LB: loop body
LE: loop exit
PB: predicated region body
PF: predicated region fallthrough
CT: control target
= control target key end

     0   :  { %s4688_s0 = inlined_call_operand.hbm [shape: bf16[128,128], index: 0, kind: input, shape index: {}]   ;;  %s4689_s1 = inlined_call_operand.hbm [shape: bf16[128,128], index: 1, kind: input, shape index: {}]   ;;  %s4690_s2 = inlined_call_operand.vmem [shape: f32[8,128], index: 2, kind: input, shape index: {}]   ;;  %s4691_s3 = inlined_call_operand.vmem [shape: f32[128,8], index: 3, kind: input, shape index: {}]   ;;  %s4692_s4 = inlined_call_operand.hbm [shape: bf16[128,128], index: 4, kind: input, shape index: {}]   ;;  %s4693_s5 = inlined_call_operand.hbm [shape: bf16[128,128], index: 5, kind: input, shape index: {}]   ;;  %s4694_s6 = inlined_call_operand.vmem [shape: bf16[256,128], index: 6, kind: input, shape index: {}]   ;;  %s4695_s7 = inlined_call_operand.hbm [shape: bf16[128,128], index: 7, kind: input, shape index: {}]   ;;  %s4696_s8 = inlined_call_operand.hbm [shape: bf16[128,128], index: 8, kind: input, shape index: {}]   ;;  %s4697_s9 = inlined_call_operand.vmem [shape: f32[8,128], index: 9, kind: input, shape index: {}]   ;;  %s4698_s10 = inlined_call_operand.hbm [shape: f32[8,128], index: 10, kind: output, shape index: {}]  }
   0x1   :  { %4730 = sst [smem:[#allocation69_spill]] %s4688_s0 }
   0x2   :  { %4731 = sst [smem:[#allocation70_spill]] %s4689_s1 }
   0x3   :  { %4732 = sst [smem:[#allocation71_spill]] %s4698_s10 }
   0x4   :  { %15 = vsyncpa [#allocation9], 0 }
   0x5   :  { %16 = vsyncpa [#allocation12], 0 }
   0x6   :  { %17 = vsyncpa [#allocation15], 0 }
   0x7   :  { %18 = vsyncpa [#allocation18], 0 }
   0x8   :  { %19 = vsyncpa [#allocation10], 0  ;;  %s3567_s13 = smov 0   ;;  %s3569_s14 = smov 0  }
   0x9   :  { %s3571_s15 = smov 0  }
   0xa LB: > { %s4699_s16 = sadd.s32 4294967295, %s3487_s15   ;;  %p2644_p0 = scmp.ge.s32.totalorder %s3487_s15, 1  ;;  %s3487_s15 = sphi %s3571_s15, %s25_s15   ;;  %s3483_s14 = sphi %s3569_s14, %s4842_s14   ;;  %s3479_s13 = sphi %s3567_s13, %s4841_s13  }
   0xb   : > { %p288_p1 = scmp.lt.s32.totalorder %s3487_s15, 3  ;;  %p3587_p2 = scmp.eq.s32.totalorder %s4699_s16, 0 }
   0xc   : > { %s3489_s19 = smov [#allocation11]   ;;  %s3490_s21 = smov [#allocation14]  }
   0xd   : > { %s4733_s17 = scalar_select %p3587_p2, 1, 0 }
   0xe   : > { %p3591_p3 = pnand %p2644_p0, %p288_p1  ;;  %s316_s20 = sshll.u32 %s3489_s19, 4  ;;  %s3595_s20 = int_to_ptr.vmem [resolvable:$true] %s316_s20 }
   0xf   : > { %s358_s22 = sshll.u32 %s3490_s21, 4  ;;  %s4736_s1 = sld [smem:[#allocation70_spill]]  ;;  %s3599_s22 = int_to_ptr.vmem [resolvable:$true] %s358_s22 }
  0x10   : > { %s4734_s18 = scalar_select %p3591_p3, 1, 0 }
  0x11   : > { %p3083_p4 = pneg %p3591_p3 }
  0x13   : > { %p3603_p5 = pnand %p3587_p2, %p3083_p4 }
  0x15   : > { %s3251_s27 = scalar_lea.hbm %s4736_s1, 1024  ;;  %p3616_p7 = pneg %p3603_p5 }
  0x16   : > { %p3252_p6 = scmp.ne.s32.totalorder %s4736_s1, %s3251_s27  ;;  %p3258_p10 = scmp.lt.u32.totalorder %s3251_s27, %s4736_s1 }
  0x18   : > { %p3254_p8 = pnand %p3616_p7, %p3252_p6 }
  0x1a   : > { %p3255_p9 = pneg %p3254_p8 }
  0x1c   : > { %p3260_p11 = pnand %p3258_p10, %p3255_p9 }
  0x1e   : > { %3263 = shalt.err (!%p3260_p11)
}
  0x1f   : > { %s3264_s19 = scalar_lea.vmem %s3595_s20, 1024  ;;  %p3272_p1 = scmp.lt.s32.totalorder %s3595_s20, %s3595_s20 }
  0x20   : > { %p3265_p12 = scmp.ne.s32.totalorder %s3595_s20, %s3264_s19  ;;  %p3273_p4 = scmp.lt.s32.totalorder %s3264_s19, %s3264_s19 }
  0x22   : > { %p3267_p13 = pnand %p3265_p12, %p3616_p7  ;;  %p3274_p6 = por %p3273_p4, %p3272_p1 }
  0x24   : > { %p3268_p0 = pneg %p3267_p13 }
  0x26   : > { %p3275_p8 = pnand %p3274_p6, %p3268_p0 }
  0x28   : > { %3278 = shalt.err (!%p3275_p8)
}
  0x29   : > { %s3491_s21 = smov 64   ;;  %s3492_s25 = smov 4  }
  0x2a   : > { %3089 = dma.hbm_to_vmem [thread:$0]  (!%p3603_p5), %s4736_s1, 1024, %s3595_s20, [#allocation12], %s3491_s21, %s3491_s21, %s3492_s25  }
  0x2b   : > { %s3279_s11 = scalar_lea.hbm %s4693_s5, 1024 }
  0x2c   : > { %p3280_p9 = scmp.ne.s32.totalorder %s4693_s5, %s3279_s11  ;;  %p3286_p12 = scmp.lt.u32.totalorder %s3279_s11, %s4693_s5 }
  0x2e   : > { %p3282_p10 = pnand %p3280_p9, %p3616_p7 }
  0x30   : > { %p3283_p11 = pneg %p3282_p10 }
  0x32   : > { %p3288_p13 = pnand %p3286_p12, %p3283_p11 }
  0x34   : > { %3291 = shalt.err (!%p3288_p13)
}
  0x35   : > { %s3292_s20 = scalar_lea.vmem %s3599_s22, 1024  ;;  %p3300_p6 = scmp.lt.s32.totalorder %s3599_s22, %s3599_s22 }
  0x36   : > { %p3293_p0 = scmp.ne.s32.totalorder %s3599_s22, %s3292_s20  ;;  %p3301_p8 = scmp.lt.s32.totalorder %s3292_s20, %s3292_s20 }
  0x38   : > { %p3295_p1 = pnand %p3293_p0, %p3616_p7  ;;  %p3302_p9 = por %p3301_p8, %p3300_p6 }
  0x3a   : > { %p3296_p4 = pneg %p3295_p1 }
  0x3c   : > { %p3303_p10 = pnand %p3302_p9, %p3296_p4 }
  0x3e   : > { %3306 = shalt.err (!%p3303_p10)
}
  0x3f   : > { %3095 = dma.hbm_to_vmem [thread:$0]  (!%p3603_p5), %s4693_s5, 1024, %s3599_s22, [#allocation15], %s3491_s21, %s3491_s21, %s3492_s25  }
  0x40   : > { %s4738_s26 = sadd.s32 1, %s3483_s14  ;;  %s3493_s27 = smov [#allocation8]  }
  0x41   : > { %p39_p11 = scmp.ge.s32.totalorder %s4738_s26, 2  ;;  %s303_s28 = sshll.u32 %s3493_s27, 4  ;;  %s304_s28 = int_to_ptr.vmem [resolvable:$true] %s303_s28 }
  0x42   : > { %s4739_s29 = smov %s4738_s26  ;;  %s3494_s11 = smov [#allocation13]  }
  0x43   : > { %s4844_s29 = smov (%p39_p11, %s4739_s29), 0  ;;  %s345_s12 = sshll.u32 %s3494_s11, 4  ;;  %s346_s12 = int_to_ptr.vmem [resolvable:$true] %s345_s12 }
  0x44   : > { %s4740_s0 = sld [smem:[#allocation69_spill]] }
  0x4a   : > { %s3307_s1 = scalar_lea.hbm %s4740_s0, 1024 }
  0x4b   : > { %p3308_p12 = scmp.ne.s32.totalorder %s4740_s0, %s3307_s1  ;;  %p3314_p1 = scmp.lt.u32.totalorder %s3307_s1, %s4740_s0 }
  0x4d   : > { %p3310_p13 = pnand %p3308_p12, %p3616_p7 }
  0x4f   : > { %p3311_p0 = pneg %p3310_p13 }
  0x51   : > { %p3316_p4 = pnand %p3314_p1, %p3311_p0 }
  0x53   : > { %3319 = shalt.err (!%p3316_p4)
}
  0x54   : > { %s3320_s26 = scalar_lea.vmem %s304_s28, 1024  ;;  %p3328_p10 = scmp.lt.s32.totalorder %s304_s28, %s304_s28 }
  0x55   : > { %p3321_p6 = scmp.ne.s32.totalorder %s304_s28, %s3320_s26  ;;  %p3329_p11 = scmp.lt.s32.totalorder %s3320_s26, %s3320_s26 }
  0x57   : > { %p3323_p8 = pnand %p3321_p6, %p3616_p7  ;;  %p3330_p2 = por %p3329_p11, %p3328_p10 }
  0x59   : > { %p3324_p9 = pneg %p3323_p8 }
  0x5b   : > { %p3331_p3 = pnand %p3330_p2, %p3324_p9 }
  0x5d   : > { %3334 = shalt.err (!%p3331_p3)
}
  0x5e   : > { %3086 = dma.hbm_to_vmem [thread:$0]  (!%p3603_p5), %s4740_s0, 1024, %s304_s28, [#allocation9], %s3491_s21, %s3491_s21, %s3492_s25  }
  0x5f   : > { %s3335_s19 = scalar_lea.hbm %s4692_s4, 1024 }
  0x60   : > { %p3336_p2 = scmp.ne.s32.totalorder %s4692_s4, %s3335_s19  ;;  %p3342_p13 = scmp.lt.u32.totalorder %s3335_s19, %s4692_s4 }
  0x62   : > { %p3338_p3 = pnand %p3336_p2, %p3616_p7 }
  0x64   : > { %p3339_p12 = pneg %p3338_p3 }
  0x66   : > { %p3344_p0 = pnand %p3342_p13, %p3339_p12 }
  0x68   : > { %3347 = shalt.err (!%p3344_p0)
}
  0x69   : > { %s3348_s26 = scalar_lea.vmem %s346_s12, 1024  ;;  %p3356_p8 = scmp.lt.s32.totalorder %s346_s12, %s346_s12 }
  0x6a   : > { %p3349_p1 = scmp.ne.s32.totalorder %s346_s12, %s3348_s26  ;;  %p3357_p9 = scmp.lt.s32.totalorder %s3348_s26, %s3348_s26 }
  0x6c   : > { %p3351_p4 = pnand %p3349_p1, %p3616_p7  ;;  %p3358_p10 = por %p3357_p9, %p3356_p8 }
  0x6e   : > { %p3352_p6 = pneg %p3351_p4 }
  0x70   : > { %p3359_p11 = pnand %p3358_p10, %p3352_p6 }
  0x72   : > { %3362 = shalt.err (!%p3359_p11)
}
  0x73   : > { %3092 = dma.hbm_to_vmem [thread:$0]  (!%p3603_p5), %s4692_s4, 1024, %s346_s12, [#allocation12], %s3491_s21, %s3491_s21, %s3492_s25  }
  0x74   : > { %s3495_s1 = smov [#allocation16]   ;;  %s3496_s11 = smov [#allocation17]  }
  0x75   : > { %s374_s27 = sshll.u32 %s3495_s1, 4  ;;  %s387_s19 = sshll.u32 %s3496_s11, 4  ;;  %s375_s27 = int_to_ptr.vmem [resolvable:$true] %s374_s27  ;;  %s388_s19 = int_to_ptr.vmem [resolvable:$true] %s387_s19 }
  0x76   : > { %s3363_s22 = scalar_lea.hbm %s4695_s7, 1024 }
  0x77   : > { %p3364_p2 = scmp.ne.s32.totalorder %s4695_s7, %s3363_s22  ;;  %p3370_p13 = scmp.lt.u32.totalorder %s3363_s22, %s4695_s7 }
  0x79   : > { %p3366_p3 = pnand %p3364_p2, %p3616_p7 }
  0x7b   : > { %p3367_p12 = pneg %p3366_p3 }
  0x7d   : > { %p3372_p0 = pnand %p3370_p13, %p3367_p12 }
  0x7f   : > { %3375 = shalt.err (!%p3372_p0)
}
  0x80   : > { %s3376_s12 = scalar_lea.vmem %s375_s27, 1024  ;;  %p3384_p8 = scmp.lt.s32.totalorder %s375_s27, %s375_s27 }
  0x81   : > { %p3377_p1 = scmp.ne.s32.totalorder %s375_s27, %s3376_s12  ;;  %p3385_p9 = scmp.lt.s32.totalorder %s3376_s12, %s3376_s12 }
  0x83   : > { %p3379_p4 = pnand %p3377_p1, %p3616_p7  ;;  %p3386_p10 = por %p3385_p9, %p3384_p8 }
  0x85   : > { %p3380_p6 = pneg %p3379_p4 }
  0x87   : > { %p3387_p11 = pnand %p3386_p10, %p3380_p6 }
  0x89   : > { %3390 = shalt.err (!%p3387_p11)
}
  0x8a   : > { %3098 = dma.hbm_to_vmem [thread:$0]  (!%p3603_p5), %s4695_s7, 1024, %s375_s27, [#allocation15], %s3491_s21, %s3491_s21, %s3492_s25  }
  0x8b   : > { %s3391_s20 = scalar_lea.hbm %s4696_s8, 1024 }
  0x8c   : > { %p3392_p2 = scmp.ne.s32.totalorder %s4696_s8, %s3391_s20  ;;  %p3398_p13 = scmp.lt.u32.totalorder %s3391_s20, %s4696_s8 }
  0x8e   : > { %p3394_p3 = pnand %p3392_p2, %p3616_p7 }
  0x90   : > { %p3395_p12 = pneg %p3394_p3 }
  0x92   : > { %p3400_p0 = pnand %p3398_p13, %p3395_p12 }
  0x94   : > { %3403 = shalt.err (!%p3400_p0)
}
  0x95   : > { %s3404_s28 = scalar_lea.vmem %s388_s19, 1024  ;;  %p3412_p8 = scmp.lt.s32.totalorder %s388_s19, %s388_s19 }
  0x96   : > { %p3405_p1 = scmp.ne.s32.totalorder %s388_s19, %s3404_s28  ;;  %p3413_p9 = scmp.lt.s32.totalorder %s3404_s28, %s3404_s28 }
  0x98   : > { %p3407_p4 = pnand %p3405_p1, %p3616_p7  ;;  %p3414_p10 = por %p3413_p9, %p3412_p8 }
  0x9a   : > { %p3408_p6 = pneg %p3407_p4 }
  0x9c   : > { %p3415_p11 = pnand %p3414_p10, %p3408_p6 }
  0x9e   : > { %3418 = shalt.err (!%p3415_p11)
}
  0x9f   : > { %3101 = dma.hbm_to_vmem [thread:$0]  (!%p3603_p5), %s4696_s8, 1024, %s388_s19, [#allocation18], %s3491_s21, %s3491_s21, %s3492_s25  }
  0xa0   : > { %p4741_p2 = scmp.ne.s32.totalorder %s4734_s18, 0 }
  0xa2   : > { %406 = sbr.rel (%p4741_p2) target bundleno = 2242 (0x8c2), region = 60 }
  0xa9   : > { %p4742_p7 = scmp.ne.s32.totalorder %s4733_s17, 0 }
  0xab   : > { %3458 = dma.done.wait (%p4742_p7), [#allocation9], 1024  }
  0xac   : > { %3460 = vsyncadd (%p4742_p7), [#allocation9], 4294966272 }
  0xad   : > { %3462 = dma.done.wait (%p4742_p7), [#allocation12], 2048  }
  0xae   : > { %3464 = vsyncadd (%p4742_p7), [#allocation12], 4294965248 }
  0xaf   : > { %3466 = dma.done.wait (%p4742_p7), [#allocation15], 2048  }
  0xb0   : > { %3468 = vsyncadd (%p4742_p7), [#allocation15], 4294965248 }
  0xb1   : > { %3470 = dma.done.wait (%p4742_p7), [#allocation18], 1024  }
  0xb2   : > { %3472 = vsyncadd (%p4742_p7), [#allocation18], 4294966272  ;;  %p476_p5 = scmp.eq.s32.totalorder %s3479_s13, 0  ;;  %v3778_v0 = vld [vmem:[%s4697_s9] sm:$0xff] }
  0xb3   : > { %4743 = vst [vmem:[#allocation25_spill] sm:$0xff] %v3778_v0  ;;  %v3163_v1 = vld [vmem:[#allocation13] sm:$0xff] (%p476_p5)   ;;  %v3497_v2 = vmov (%p476_p5), -1e+30   ;;  %v3498_v3 = vmov (%p476_p5), 0.0   ;;  %v3164_v4 = vld [vmem:[#allocation13 + $0x8] sm:$0xff] (%p476_p5)  }
  0xb4   : > { %481 = sbr.rel (!%p476_p5) target bundleno = 438 (0x1b6), region = 88  ;;  %482 = vst [vmem:[#allocation4] sm:$0xff] (%p476_p5), %v3497_v2  ;;  %483 = vst [vmem:[#allocation6] sm:$0xff] (%p476_p5), %v3497_v2  ;;  %2827 = vmatprep.subr.bf16.mxu0 (%p476_p5), %v3163_v1  ;;  %3023 = vmatprep.subr.bf16.mxu1 (%p476_p5), %v3163_v1  ;;  %v3165_v5 = vld [vmem:[#allocation13 + $0x10] sm:$0xff] (%p476_p5)   ;;  %v3166_v6 = vld [vmem:[#allocation13 + $0x18] sm:$0xff] (%p476_p5)  }
  0xb5   : > { %484 = vst [vmem:[#allocation5] sm:$0xff] (%p476_p5), %v3498_v3  ;;  %485 = vst [vmem:[#allocation7] sm:$0xff] (%p476_p5), %v3498_v3  ;;  %2828 = vmatpush3.bf16.msra.mxu0 (%p476_p5), %v3163_v1  ;;  %3031 = vmatpush3.bf16.msra.mxu1 (%p476_p5), %v3163_v1  ;;  %v3171_v7 = vld [vmem:[#allocation11] sm:$0xff] (%p476_p5)   ;;  %v3168_v10 = vld [vmem:[#allocation13 + $0x28] sm:$0xff] (%p476_p5)  }
  0xb6   : > { %2829 = vmatprep.subr.bf16.mxu0 (%p476_p5), %v3164_v4  ;;  %3024 = vmatprep.subr.bf16.mxu1 (%p476_p5), %v3164_v4  ;;  %v3172_v8 = vld [vmem:[#allocation11 + $0x20] sm:$0xff] (%p476_p5)   ;;  %v3169_v11 = vld [vmem:[#allocation13 + $0x30] sm:$0xff] (%p476_p5)   ;;  %v3170_v12 = vld [vmem:[#allocation13 + $0x38] sm:$0xff] (%p476_p5)  }
  0xb7   : > { %v3167_v9 = vld [vmem:[#allocation13 + $0x20] sm:$0xff] (%p476_p5)   ;;  %2843 = vmatprep.mubr.bf16.mxu0 (%p476_p5), %v3171_v7  ;;  %2851 = vmatprep.mubr.bf16.mxu1 (%p476_p5), %v3172_v8  ;;  %v3173_v13 = vld [vmem:[#allocation11 + $0x8] sm:$0xff] (%p476_p5)   ;;  %v3175_v15 = vld [vmem:[#allocation11 + $0x10] sm:$0xff] (%p476_p5)  }
  0xb8   : > { %v3174_v14 = vld [vmem:[#allocation11 + $0x28] sm:$0xff] (%p476_p5)   ;;  %v3176_v16 = vld [vmem:[#allocation11 + $0x30] sm:$0xff] (%p476_p5)   ;;  %v3177_v17 = vld [vmem:[#allocation11 + $0x18] sm:$0xff] (%p476_p5)  }
  0xb9   : > { %2830 = vmatpush3.bf16.msra.mxu0 (%p476_p5), %v3164_v4  ;;  %3032 = vmatpush3.bf16.msra.mxu1 (%p476_p5), %v3164_v4  ;;  %v3178_v18 = vld [vmem:[#allocation11 + $0x38] sm:$0xff] (%p476_p5)  }
  0xba   : > { %2831 = vmatprep.subr.bf16.mxu0 (%p476_p5), %v3165_v5  ;;  %3025 = vmatprep.subr.bf16.mxu1 (%p476_p5), %v3165_v5 }
  0xbd   : > { %2832 = vmatpush3.bf16.msra.mxu0 %v3165_v5  ;;  %3033 = vmatpush3.bf16.msra.mxu1 %v3165_v5 }
  0xbe   : > { %2833 = vmatprep.subr.bf16.mxu0 %v3166_v6  ;;  %3026 = vmatprep.subr.bf16.mxu1 %v3166_v6 }
  0xc1   : > { %2834 = vmatpush3.bf16.msra.mxu0 %v3166_v6  ;;  %3034 = vmatpush3.bf16.msra.mxu1 %v3166_v6 }
  0xc2   : > { %2835 = vmatprep.subr.bf16.mxu0 %v3167_v9  ;;  %3027 = vmatprep.subr.bf16.mxu1 %v3167_v9 }
  0xc5   : > { %2836 = vmatpush3.bf16.msra.mxu0 %v3167_v9  ;;  %3035 = vmatpush3.bf16.msra.mxu1 %v3167_v9 }
  0xc6   : > { %2837 = vmatprep.subr.bf16.mxu0 %v3168_v10  ;;  %3028 = vmatprep.subr.bf16.mxu1 %v3168_v10 }
  0xc9   : > { %2838 = vmatpush3.bf16.msra.mxu0 %v3168_v10  ;;  %3036 = vmatpush3.bf16.msra.mxu1 %v3168_v10 }
  0xca   : > { %2839 = vmatprep.subr.bf16.mxu0 %v3169_v11  ;;  %3029 = vmatprep.subr.bf16.mxu1 %v3169_v11 }
  0xcd   : > { %2840 = vmatpush3.bf16.msra.mxu0 %v3169_v11  ;;  %3037 = vmatpush3.bf16.msra.mxu1 %v3169_v11 }
  0xce   : > { %2841 = vmatprep.subr.bf16.mxu0 %v3170_v12  ;;  %3030 = vmatprep.subr.bf16.mxu1 %v3170_v12 }
  0xd1   : > { %2842 = vmatpush3.bf16.msra.mxu0 %v3170_v12  ;;  %3038 = vmatpush3.bf16.msra.mxu1 %v3170_v12 }
  0xd4   : > { %2844 = vmatmul.mubr.bf16.vlgmr.msra.gmra.mrb[0].mxu0 %v3173_v13  ;;  %2852 = vmatmul.mubr.bf16.vlgmr.msra.gmra.mrb[0].mxu1 %v3174_v14 }
  0xd5   : > { %2847 = vmatprep.mubr.bf16.mxu0 %v3175_v15  ;;  %2855 = vmatprep.mubr.bf16.mxu1 %v3176_v16 }
  0xdc   : > { %2848 = vmatmul.mubr.bf16.gmra.mrb[4].mxu0 %v3177_v17  ;;  %2856 = vmatmul.mubr.bf16.gmra.mrb[4].mxu1 %v3178_v18 }
 0x1a7   : > { %v2845_v19 = vpop.f32.mrb[0].mxu0  ;;  %v2853_v20 = vpop.f32.mrb[0].mxu1 }
 0x1a8   : > { %v648_v21 = vpop.f32.mrb[1].mxu0  ;;  %v680_v22 = vpop.f32.mrb[1].mxu1 }
 0x1a9   : > { %v2846_v23 = vpop.f32.mrb[2].mxu0  ;;  %v2854_v24 = vpop.f32.mrb[2].mxu1 }
 0x1aa   : > { %v712_v25 = vpack.c.bf16 %v2846_v23, %v2845_v19  ;;  %v716_v26 = vpack.c.bf16 %v2854_v24, %v2853_v20  ;;  %v651_v27 = vpop.f32.mrb[3].mxu0  ;;  %v683_v28 = vpop.f32.mrb[3].mxu1 }
 0x1ab   : > { %v711_v29 = vpack.c.bf16 %v651_v27, %v648_v21  ;;  %v715_v30 = vpack.c.bf16 %v683_v28, %v680_v22 }
 0x1ac   : > { %720 = vst [vmem:[#allocation2 + $0x8] sm:$0xff] %v712_v25  ;;  %724 = vst [vmem:[#allocation2 + $0x28] sm:$0xff] %v716_v26 }
 0x1ad   : > { %719 = vst [vmem:[#allocation2] sm:$0xff] %v711_v29  ;;  %723 = vst [vmem:[#allocation2 + $0x20] sm:$0xff] %v715_v30 }
 0x1af   : > { %v2849_v31 = vpop.f32.mrb[4].mxu0  ;;  %v2857_v32 = vpop.f32.mrb[4].mxu1 }
 0x1b0   : > { %v664_v33 = vpop.f32.mrb[5].mxu0  ;;  %v696_v34 = vpop.f32.mrb[5].mxu1 }
 0x1b1   : > { %v2850_v35 = vpop.f32.mrb[6].mxu0  ;;  %v2858_v36 = vpop.f32.mrb[6].mxu1 }
 0x1b2   : > { %v714_v37 = vpack.c.bf16 %v2850_v35, %v2849_v31  ;;  %v718_v38 = vpack.c.bf16 %v2858_v36, %v2857_v32  ;;  %v667_v39 = vpop.f32.mrb[7].mxu0  ;;  %v699_v40 = vpop.f32.mrb[7].mxu1 }
 0x1b3   : > { %v713_v41 = vpack.c.bf16 %v667_v39, %v664_v33  ;;  %v717_v42 = vpack.c.bf16 %v699_v40, %v696_v34 }
 0x1b4   : > { %722 = vst [vmem:[#allocation2 + $0x18] sm:$0xff] %v714_v37  ;;  %726 = vst [vmem:[#allocation2 + $0x38] sm:$0xff] %v718_v38 }
 0x1b5   : > { %721 = vst [vmem:[#allocation2 + $0x10] sm:$0xff] %v713_v41  ;;  %725 = vst [vmem:[#allocation2 + $0x30] sm:$0xff] %v717_v42 }
 0x1b6 PF: > { %p727_p3 = scmp.eq.s32.totalorder %s3479_s13, 1 }
 0x1b7   : > { %v3179_v43 = vld [vmem:[#allocation14] sm:$0xff] (%p727_p3)   ;;  %v3180_v44 = vld [vmem:[#allocation14 + $0x8] sm:$0xff] (%p727_p3)   ;;  %v3181_v45 = vld [vmem:[#allocation14 + $0x10] sm:$0xff] (%p727_p3)  }
 0x1b8   : > { %731 = sbr.rel (!%p727_p3) target bundleno = 698 (0x2ba), region = 92  ;;  %2859 = vmatprep.subr.bf16.mxu0 (%p727_p3), %v3179_v43  ;;  %3039 = vmatprep.subr.bf16.mxu1 (%p727_p3), %v3179_v43  ;;  %v3182_v46 = vld [vmem:[#allocation14 + $0x18] sm:$0xff] (%p727_p3)   ;;  %v732_v47 = vld [vmem:[#allocation3] sm:$0xff] (%p727_p3)  ;;  %v3184_v50 = vld [vmem:[#allocation14 + $0x28] sm:$0xff] (%p727_p3)  }
 0x1b9   : > { %2860 = vmatpush3.bf16.msra.mxu0 (%p727_p3), %v3179_v43  ;;  %3047 = vmatpush3.bf16.msra.mxu1 (%p727_p3), %v3179_v43  ;;  %v736_v48 = vld [vmem:[#allocation3 + $0x20] sm:$0xff] (%p727_p3)  ;;  %v3185_v51 = vld [vmem:[#allocation14 + $0x30] sm:$0xff] (%p727_p3)   ;;  %v3186_v52 = vld [vmem:[#allocation14 + $0x38] sm:$0xff] (%p727_p3)  }
 0x1ba   : > { %2861 = vmatprep.subr.bf16.mxu0 (%p727_p3), %v3180_v44  ;;  %3040 = vmatprep.subr.bf16.mxu1 (%p727_p3), %v3180_v44  ;;  %v3183_v49 = vld [vmem:[#allocation14 + $0x20] sm:$0xff] (%p727_p3)   ;;  %v733_v53 = vld [vmem:[#allocation3 + $0x8] sm:$0xff] (%p727_p3)  ;;  %v734_v55 = vld [vmem:[#allocation3 + $0x10] sm:$0xff] (%p727_p3) }
 0x1bb   : > { %2875 = vmatprep.mubr.bf16.mxu0 (%p727_p3), %v732_v47  ;;  %2883 = vmatprep.mubr.bf16.mxu1 (%p727_p3), %v736_v48  ;;  %v737_v54 = vld [vmem:[#allocation3 + $0x28] sm:$0xff] (%p727_p3)  ;;  %v738_v56 = vld [vmem:[#allocation3 + $0x30] sm:$0xff] (%p727_p3)  ;;  %v735_v57 = vld [vmem:[#allocation3 + $0x18] sm:$0xff] (%p727_p3) }
 0x1bc   : > { %v739_v58 = vld [vmem:[#allocation3 + $0x38] sm:$0xff] (%p727_p3) }
 0x1bd   : > { %2862 = vmatpush3.bf16.msra.mxu0 (%p727_p3), %v3180_v44  ;;  %3048 = vmatpush3.bf16.msra.mxu1 (%p727_p3), %v3180_v44 }
 0x1be   : > { %2863 = vmatprep.subr.bf16.mxu0 (%p727_p3), %v3181_v45  ;;  %3041 = vmatprep.subr.bf16.mxu1 (%p727_p3), %v3181_v45 }
 0x1c1   : > { %2864 = vmatpush3.bf16.msra.mxu0 %v3181_v45  ;;  %3049 = vmatpush3.bf16.msra.mxu1 %v3181_v45 }
 0x1c2   : > { %2865 = vmatprep.subr.bf16.mxu0 %v3182_v46  ;;  %3042 = vmatprep.subr.bf16.mxu1 %v3182_v46 }
 0x1c5   : > { %2866 = vmatpush3.bf16.msra.mxu0 %v3182_v46  ;;  %3050 = vmatpush3.bf16.msra.mxu1 %v3182_v46 }
 0x1c6   : > { %2867 = vmatprep.subr.bf16.mxu0 %v3183_v49  ;;  %3043 = vmatprep.subr.bf16.mxu1 %v3183_v49 }
 0x1c9   : > { %2868 = vmatpush3.bf16.msra.mxu0 %v3183_v49  ;;  %3051 = vmatpush3.bf16.msra.mxu1 %v3183_v49 }
 0x1ca   : > { %2869 = vmatprep.subr.bf16.mxu0 %v3184_v50  ;;  %3044 = vmatprep.subr.bf16.mxu1 %v3184_v50 }
 0x1cd   : > { %2870 = vmatpush3.bf16.msra.mxu0 %v3184_v50  ;;  %3052 = vmatpush3.bf16.msra.mxu1 %v3184_v50 }
 0x1ce   : > { %2871 = vmatprep.subr.bf16.mxu0 %v3185_v51  ;;  %3045 = vmatprep.subr.bf16.mxu1 %v3185_v51 }
 0x1d1   : > { %2872 = vmatpush3.bf16.msra.mxu0 %v3185_v51  ;;  %3053 = vmatpush3.bf16.msra.mxu1 %v3185_v51 }
 0x1d2   : > { %2873 = vmatprep.subr.bf16.mxu0 %v3186_v52  ;;  %3046 = vmatprep.subr.bf16.mxu1 %v3186_v52 }
 0x1d5   : > { %2874 = vmatpush3.bf16.msra.mxu0 %v3186_v52  ;;  %3054 = vmatpush3.bf16.msra.mxu1 %v3186_v52 }
 0x1d8   : > { %2876 = vmatmul.mubr.bf16.vlgmr.msra.gmra.mrb[0].mxu0 %v733_v53  ;;  %2884 = vmatmul.mubr.bf16.vlgmr.msra.gmra.mrb[0].mxu1 %v737_v54 }
 0x1d9   : > { %2879 = vmatprep.mubr.bf16.mxu0 %v734_v55  ;;  %2887 = vmatprep.mubr.bf16.mxu1 %v738_v56 }
 0x1e0   : > { %2880 = vmatmul.mubr.bf16.gmra.mrb[4].mxu0 %v735_v57  ;;  %2888 = vmatmul.mubr.bf16.gmra.mrb[4].mxu1 %v739_v58 }
 0x2ab   : > { %v2877_v59 = vpop.f32.mrb[0].mxu0  ;;  %v2885_v60 = vpop.f32.mrb[0].mxu1 }
 0x2ac   : > { %v838_v61 = vpop.f32.mrb[1].mxu0  ;;  %v870_v62 = vpop.f32.mrb[1].mxu1 }
 0x2ad   : > { %v2878_v63 = vpop.f32.mrb[2].mxu0  ;;  %v2886_v1 = vpop.f32.mrb[2].mxu1 }
 0x2ae   : > { %v902_v2 = vpack.c.bf16 %v2878_v63, %v2877_v59  ;;  %v906_v3 = vpack.c.bf16 %v2886_v1, %v2885_v60  ;;  %v841_v4 = vpop.f32.mrb[3].mxu0  ;;  %v873_v5 = vpop.f32.mrb[3].mxu1 }
 0x2af   : > { %v901_v6 = vpack.c.bf16 %v841_v4, %v838_v61  ;;  %v905_v7 = vpack.c.bf16 %v873_v5, %v870_v62 }
 0x2b0   : > { %910 = vst [vmem:[#allocation2 + $0x8] sm:$0xff] %v902_v2  ;;  %914 = vst [vmem:[#allocation2 + $0x28] sm:$0xff] %v906_v3 }
 0x2b1   : > { %909 = vst [vmem:[#allocation2] sm:$0xff] %v901_v6  ;;  %913 = vst [vmem:[#allocation2 + $0x20] sm:$0xff] %v905_v7 }
 0x2b3   : > { %v2881_v8 = vpop.f32.mrb[4].mxu0  ;;  %v2889_v9 = vpop.f32.mrb[4].mxu1 }
 0x2b4   : > { %v854_v10 = vpop.f32.mrb[5].mxu0  ;;  %v886_v11 = vpop.f32.mrb[5].mxu1 }
 0x2b5   : > { %v2882_v12 = vpop.f32.mrb[6].mxu0  ;;  %v2890_v13 = vpop.f32.mrb[6].mxu1 }
 0x2b6   : > { %v904_v14 = vpack.c.bf16 %v2882_v12, %v2881_v8  ;;  %v908_v15 = vpack.c.bf16 %v2890_v13, %v2889_v9  ;;  %v857_v16 = vpop.f32.mrb[7].mxu0  ;;  %v889_v17 = vpop.f32.mrb[7].mxu1 }
 0x2b7   : > { %v903_v18 = vpack.c.bf16 %v857_v16, %v854_v10  ;;  %v907_v19 = vpack.c.bf16 %v889_v17, %v886_v11 }
 0x2b8   : > { %912 = vst [vmem:[#allocation2 + $0x18] sm:$0xff] %v904_v14  ;;  %916 = vst [vmem:[#allocation2 + $0x38] sm:$0xff] %v908_v15 }
 0x2b9   : > { %911 = vst [vmem:[#allocation2 + $0x10] sm:$0xff] %v903_v18  ;;  %915 = vst [vmem:[#allocation2 + $0x30] sm:$0xff] %v907_v19 }
 0x2ba PF: > { %v940_v20 = vld [vmem:[#allocation2] sm:$0xff]  ;;  %v3788_v21 = vld [vmem:[%s4691_s3 + $0x10] sm:$0xff]  ;;  %v3499_v23 = vmov 0   ;;  %v941_v24 = vld [vmem:[#allocation2 + $0x8] sm:$0xff]  ;;  %v3500_v48 = vmov 1   ;;  %v3501_v54 = vmov 2  }
 0x2bb   : > { %v3793_v22 = vld [vmem:[%s4691_s3] sm:$0xff]  ;;  %3188 = vset.pattern.permute.xlu1 %v3499_v23  ;;  %3187 = vset.pattern.permute.xlu0 %v3499_v23  ;;  %v3800_v25 = vld [vmem:[%s4691_s3 + $0x18] sm:$0xff]  ;;  %v3805_v26 = vld [vmem:[%s4691_s3 + $0x8] sm:$0xff]  ;;  %v3502_v55 = vmov 3   ;;  %v4704_v56 = vmov 0.0   ;;  %v3504_v58 = vmov 4  }
 0x2bc   : > { %2891 = vmatprep.subr.bf16.mxu0 %v940_v20  ;;  %1191 = vperm.xlu1 %3188, %v3788_v21   ;;  %v3812_v28 = vld [vmem:[%s4691_s3 + $0x28] sm:$0xff]  ;;  %v3817_v29 = vld [vmem:[%s4691_s3 + $0x20] sm:$0xff]  ;;  %v3824_v32 = vld [vmem:[%s4691_s3 + $0x38] sm:$0xff]  ;;  %vm3505_vm0 = vmmov 0   ;;  %v3506_v11 = vmov 5   ;;  %vm2003_vm2 = vcmask 1040384  }
 0x2bd   : > { %1181 = vperm.xlu0 %3187, %v3793_v22   ;;  %2892 = vmatpush3.bf16.msra.mxu0 %v940_v20  ;;  %v3207_v30 = vld [vmem:[#allocation8] sm:$0xff]   ;;  %v3829_v33 = vld [vmem:[%s4691_s3 + $0x30] sm:$0xff]  ;;  %v3836_v35 = vld [vmem:[%s4691_s3 + $0x48] sm:$0xff]  ;;  %s917_s26 = scalar_select %p476_p5, 1, 0  ;;  %vm2005_vm3 = vcmask 1041408  }
 0x2be   : > { %2893 = vmatprep.subr.bf16.mxu0 %v941_v24  ;;  %2907 = vmatprep.mubr.bf16.mxu0 %v3207_v30  ;;  %v944_v34 = vld [vmem:[#allocation2 + $0x20] sm:$0xff]  ;;  %v945_v37 = vld [vmem:[#allocation2 + $0x28] sm:$0xff]  ;;  %v3848_v38 = vld [vmem:[%s4691_s3 + $0x58] sm:$0xff]  ;;  %vm2007_vm4 = vcmask 1042432   ;;  %vm2009_vm5 = vcmask 1043456   ;;  %vm2011_vm6 = vcmask 1044480  }
 0x2bf   : > { %v943_v31 = vld [vmem:[#allocation2 + $0x18] sm:$0xff]  ;;  %v3841_v36 = vld [vmem:[%s4691_s3 + $0x40] sm:$0xff]  ;;  %v3853_v39 = vld [vmem:[%s4691_s3 + $0x50] sm:$0xff]  ;;  %2923 = vmatprep.subr.bf16.mxu1 %v4704_v56  ;;  %2939 = vmatprep.mubr.msk.bf16.mxu1 %vm3505_vm0, %v4704_v56  ;;  %vm2013_vm7 = vcmask 1045504   ;;  %vm2015_vm8 = vcmask 1046528   ;;  %p2694_p12 = scmp.ne.s32.totalorder %s3479_s13, 0 }
 0x2c0   : > { %v942_v27 = vld [vmem:[#allocation2 + $0x10] sm:$0xff]  ;;  %1196 = vperm.xlu1 %3188, %v3800_v25   ;;  %v3860_v41 = vld [vmem:[%s4691_s3 + $0x68] sm:$0xff]  ;;  %v3865_v42 = vld [vmem:[%s4691_s3 + $0x60] sm:$0xff] }
 0x2c1   : > { %1186 = vperm.xlu0 %3187, %v3805_v26   ;;  %2894 = vmatpush3.bf16.msra.mxu0 %v941_v24  ;;  %v946_v40 = vld [vmem:[#allocation2 + $0x30] sm:$0xff]  ;;  %v947_v43 = vld [vmem:[#allocation2 + $0x38] sm:$0xff]  ;;  %v3208_v46 = vld [vmem:[#allocation8 + $0x8] sm:$0xff]  }
 0x2c2   : > { %2895 = vmatprep.subr.bf16.mxu0 %v942_v27  ;;  %v3872_v44 = vld [vmem:[%s4691_s3 + $0x78] sm:$0xff]  ;;  %v3877_v45 = vld [vmem:[%s4691_s3 + $0x70] sm:$0xff]  ;;  %v3211_v50 = vld [vmem:[#allocation8 + $0x20] sm:$0xff]  }
 0x2c3   : > { %v3209_v47 = vld [vmem:[#allocation8 + $0x10] sm:$0xff]   ;;  %v3210_v49 = vld [vmem:[#allocation8 + $0x18] sm:$0xff]   ;;  %v3212_v51 = vld [vmem:[#allocation8 + $0x28] sm:$0xff]  }
 0x2c4   : > { %1206 = vperm.xlu1 %3188, %v3812_v28   ;;  %v3213_v52 = vld [vmem:[#allocation8 + $0x30] sm:$0xff]   ;;  %v3214_v53 = vld [vmem:[#allocation8 + $0x38] sm:$0xff]  }
 0x2c5   : > { %1201 = vperm.xlu0 %3187, %v3817_v29   ;;  %2896 = vmatpush3.bf16.msra.mxu0 %v942_v27 }
 0x2c6   : > { %2897 = vmatprep.subr.bf16.mxu0 %v943_v31 }
 0x2c8   : > { %1216 = vperm.xlu1 %3188, %v3824_v32  }
 0x2c9   : > { %1211 = vperm.xlu0 %3187, %v3829_v33   ;;  %2898 = vmatpush3.bf16.msra.mxu0 %v943_v31 }
 0x2ca   : > { %2899 = vmatprep.subr.bf16.mxu0 %v944_v34 }
 0x2cc   : > { %1226 = vperm.xlu1 %3188, %v3836_v35  }
 0x2cd   : > { %1221 = vperm.xlu0 %3187, %v3841_v36   ;;  %2900 = vmatpush3.bf16.msra.mxu0 %v944_v34 }
 0x2ce   : > { %2901 = vmatprep.subr.bf16.mxu0 %v945_v37 }
 0x2d0   : > { %1236 = vperm.xlu1 %3188, %v3848_v38  }
 0x2d1   : > { %1231 = vperm.xlu0 %3187, %v3853_v39   ;;  %2902 = vmatpush3.bf16.msra.mxu0 %v945_v37 }
 0x2d2   : > { %2903 = vmatprep.subr.bf16.mxu0 %v946_v40 }
 0x2d4   : > { %1246 = vperm.xlu1 %3188, %v3860_v41  }
 0x2d5   : > { %1241 = vperm.xlu0 %3187, %v3865_v42   ;;  %2904 = vmatpush3.bf16.msra.mxu0 %v946_v40  ;;  %v4706_v40 = vmov 6  }
 0x2d6   : > { %2905 = vmatprep.subr.bf16.mxu0 %v947_v43 }
 0x2d8   : > { %1256 = vperm.xlu1 %3188, %v3872_v44  }
 0x2d9   : > { %1251 = vperm.xlu0 %3187, %v3877_v45   ;;  %2906 = vmatpush3.bf16.msra.mxu0 %v947_v43 }
 0x2dc   : > { %2908 = vmatmul.mubr.bf16.vlgmr.msra.gmra.mrb[0].mxu0 %v3208_v46  ;;  %3190 = vset.pattern.permute.xlu1 %v3500_v48 }
 0x2dd   : > { %3189 = vset.pattern.permute.xlu0 %v3500_v48  ;;  %1301 = vperm.xlu1 %3190, %v3805_v26  }
 0x2de   : > { %1297 = vperm.xlu0 %3189, %v3793_v22   ;;  %2911 = vmatprep.mubr.bf16.mxu0 %v3209_v47 }
 0x2e1   : > { %1305 = vperm.xlu1 %3190, %v3788_v21  }
 0x2e2   : > { %1309 = vperm.xlu0 %3189, %v3800_v25  }
 0x2e4   : > { %2912 = vmatmul.mubr.bf16.gmra.mrb[4].mxu0 %v3210_v49 }
 0x2e5   : > { %1313 = vperm.xlu1 %3190, %v3817_v29   ;;  %2915 = vmatprep.mubr.bf16.mxu0 %v3211_v50 }
 0x2e6   : > { %1317 = vperm.xlu0 %3189, %v3812_v28  }
 0x2e9   : > { %1321 = vperm.xlu1 %3190, %v3829_v33  }
 0x2ea   : > { %1325 = vperm.xlu0 %3189, %v3824_v32  }
 0x2ec   : > { %2916 = vmatmul.mubr.bf16.gmra.mrb[8].mxu0 %v3212_v51 }
 0x2ed   : > { %1329 = vperm.xlu1 %3190, %v3841_v36   ;;  %2919 = vmatprep.mubr.bf16.mxu0 %v3213_v52 }
 0x2ee   : > { %1333 = vperm.xlu0 %3189, %v3836_v35  }
 0x2f1   : > { %1337 = vperm.xlu1 %3190, %v3853_v39  }
 0x2f2   : > { %1341 = vperm.xlu0 %3189, %v3848_v38  }
 0x2f4   : > { %2920 = vmatmul.mubr.bf16.gmra.mrb[12].mxu0 %v3214_v53 }
 0x2f5   : > { %1345 = vperm.xlu1 %3190, %v3865_v42  }
 0x2f6   : > { %1349 = vperm.xlu0 %3189, %v3860_v41  }
 0x2f9   : > { %1353 = vperm.xlu1 %3190, %v3877_v45  }
 0x2fa   : > { %1357 = vperm.xlu0 %3189, %v3872_v44  }
 0x2fd   : > { %3191 = vset.pattern.permute.xlu1 %v3501_v54 }
 0x2fe   : > { %3192 = vset.pattern.permute.xlu0 %v3501_v54  ;;  %1398 = vperm.xlu1 %3191, %v3793_v22  }
 0x2ff   : > { %1402 = vperm.xlu0 %3192, %v3805_v26  }
 0x302   : > { %1406 = vperm.xlu1 %3191, %v3788_v21  }
 0x303   : > { %1414 = vperm.xlu0 %3192, %v3817_v29  }
 0x306   : > { %1410 = vperm.xlu1 %3191, %v3800_v25  }
 0x307   : > { %1422 = vperm.xlu0 %3192, %v3829_v33  }
 0x30a   : > { %1418 = vperm.xlu1 %3191, %v3812_v28  }
 0x30b   : > { %1430 = vperm.xlu0 %3192, %v3841_v36  }
 0x30e   : > { %1426 = vperm.xlu1 %3191, %v3824_v32  }
 0x30f   : > { %1438 = vperm.xlu0 %3192, %v3853_v39  }
 0x312   : > { %1434 = vperm.xlu1 %3191, %v3836_v35  }
 0x313   : > { %1446 = vperm.xlu0 %3192, %v3865_v42  }
 0x316   : > { %1442 = vperm.xlu1 %3191, %v3848_v38  }
 0x317   : > { %1454 = vperm.xlu0 %3192, %v3877_v45  }
 0x31a   : > { %1450 = vperm.xlu1 %3191, %v3860_v41  }
 0x31b   : > { %3193 = vset.pattern.permute.xlu0 %v3502_v55 }
 0x31c   : > { %1499 = vperm.xlu0 %3193, %v3793_v22  }
 0x31e   : > { %1458 = vperm.xlu1 %3191, %v3872_v44  }
 0x320   : > { %1511 = vperm.xlu0 %3193, %v3800_v25  }
 0x322   : > { %3194 = vset.pattern.permute.xlu1 %v3502_v55 }
 0x323   : > { %1503 = vperm.xlu1 %3194, %v3805_v26  }
 0x324   : > { %1519 = vperm.xlu0 %3193, %v3812_v28  }
 0x327   : > { %1507 = vperm.xlu1 %3194, %v3788_v21  }
 0x328   : > { %1527 = vperm.xlu0 %3193, %v3824_v32  }
 0x32b   : > { %1515 = vperm.xlu1 %3194, %v3817_v29  }
 0x32c   : > { %1535 = vperm.xlu0 %3193, %v3836_v35  }
 0x32f   : > { %1523 = vperm.xlu1 %3194, %v3829_v33  }
 0x330   : > { %1543 = vperm.xlu0 %3193, %v3848_v38  }
 0x333   : > { %1531 = vperm.xlu1 %3194, %v3841_v36  }
 0x334   : > { %1551 = vperm.xlu0 %3193, %v3860_v41  }
 0x337   : > { %1539 = vperm.xlu1 %3194, %v3853_v39  }
 0x338   : > { %1559 = vperm.xlu0 %3193, %v3872_v44  }
 0x33b   : > { %1547 = vperm.xlu1 %3194, %v3865_v42   ;;  %v3929_v57 = vpop.permute.xlu1 %1191 }
 0x33c   : > { %3196 = vset.pattern.permute.xlu0 %v3504_v58  ;;  %v3931_v59 = vpop.permute.xlu0 %1181 }
 0x33d   : > { %1604 = vperm.xlu0 %3196, %v3805_v26  }
 0x33f   : > { %1555 = vperm.xlu1 %3194, %v3877_v45   ;;  %v3935_v60 = vpop.permute.xlu1 %1196 }
 0x340   : > { %v3937_v61 = vpop.permute.xlu0 %1186 }
 0x341   : > { %1616 = vperm.xlu0 %3196, %v3817_v29  }
 0x343   : > { %3195 = vset.pattern.permute.xlu1 %v3504_v58  ;;  %v3940_v62 = vpop.permute.xlu1 %1206 }
 0x344   : > { %1600 = vperm.xlu1 %3195, %v3793_v22   ;;  %v3943_v63 = vpop.permute.xlu0 %1201 }
 0x345   : > { %1624 = vperm.xlu0 %3196, %v3829_v33  }
 0x347   : > { %v3946_v1 = vpop.permute.xlu1 %1216 }
 0x348   : > { %1608 = vperm.xlu1 %3195, %v3788_v21   ;;  %v3949_v2 = vpop.permute.xlu0 %1211 }
 0x349   : > { %1632 = vperm.xlu0 %3196, %v3841_v36  }
 0x34b   : > { %v3952_v3 = vpop.permute.xlu1 %1226 }
 0x34c   : > { %1612 = vperm.xlu1 %3195, %v3800_v25   ;;  %v3955_v4 = vpop.permute.xlu0 %1221 }
 0x34d   : > { %1640 = vperm.xlu0 %3196, %v3853_v39  }
 0x34f   : > { %v3958_v5 = vpop.permute.xlu1 %1236 }
 0x350   : > { %1620 = vperm.xlu1 %3195, %v3812_v28   ;;  %v3961_v6 = vpop.permute.xlu0 %1231 }
 0x351   : > { %1648 = vperm.xlu0 %3196, %v3865_v42  }
 0x353   : > { %v3964_v7 = vpop.permute.xlu1 %1246 }
 0x354   : > { %1628 = vperm.xlu1 %3195, %v3824_v32   ;;  %v3967_v8 = vpop.permute.xlu0 %1241 }
 0x355   : > { %1656 = vperm.xlu0 %3196, %v3877_v45  }
 0x357   : > { %v3970_v9 = vpop.permute.xlu1 %1256 }
 0x358   : > { %1636 = vperm.xlu1 %3195, %v3836_v35   ;;  %v3973_v10 = vpop.permute.xlu0 %1251 }
 0x359   : > { %3197 = vset.pattern.permute.xlu0 %v3506_v11 }
 0x35a   : > { %1701 = vperm.xlu0 %3197, %v3793_v22  }
 0x35c   : > { %1644 = vperm.xlu1 %3195, %v3848_v38   ;;  %v3978_v12 = vpop.permute.xlu1 %1301 }
 0x35d   : > { %v3980_v13 = vpop.permute.xlu0 %1297 }
 0x35e   : > { %1713 = vperm.xlu0 %3197, %v3800_v25  }
 0x360   : > { %1652 = vperm.xlu1 %3195, %v3860_v41   ;;  %v3984_v14 = vpop.permute.xlu1 %1305 }
 0x361   : > { %v3986_v15 = vpop.permute.xlu0 %1309 }
 0x362   : > { %1721 = vperm.xlu0 %3197, %v3812_v28  }
 0x364   : > { %1660 = vperm.xlu1 %3195, %v3872_v44   ;;  %v3990_v16 = vpop.permute.xlu1 %1313 }
 0x365   : > { %v3992_v17 = vpop.permute.xlu0 %1317 }
 0x366   : > { %1729 = vperm.xlu0 %3197, %v3824_v32  }
 0x368   : > { %3198 = vset.pattern.permute.xlu1 %v3506_v11  ;;  %v3995_v18 = vpop.permute.xlu1 %1321  ;;  %v4708_v11 = vmov 7  }
 0x369   : > { %1705 = vperm.xlu1 %3198, %v3805_v26   ;;  %v3998_v19 = vpop.permute.xlu0 %1325 }
 0x36a   : > { %1737 = vperm.xlu0 %3197, %v3836_v35  }
 0x36c   : > { %v4001_v20 = vpop.permute.xlu1 %1329 }
 0x36d   : > { %1709 = vperm.xlu1 %3198, %v3788_v21   ;;  %v4004_v23 = vpop.permute.xlu0 %1333 }
 0x36e   : > { %1745 = vperm.xlu0 %3197, %v3848_v38  }
 0x370   : > { %v4007_v24 = vpop.permute.xlu1 %1337 }
 0x371   : > { %1717 = vperm.xlu1 %3198, %v3817_v29   ;;  %v4010_v27 = vpop.permute.xlu0 %1341 }
 0x372   : > { %1753 = vperm.xlu0 %3197, %v3860_v41  }
 0x374   : > { %v4013_v30 = vpop.permute.xlu1 %1345 }
 0x375   : > { %1725 = vperm.xlu1 %3198, %v3829_v33   ;;  %v4016_v31 = vpop.permute.xlu0 %1349 }
 0x376   : > { %1761 = vperm.xlu0 %3197, %v3872_v44  }
 0x378   : > { %v4019_v34 = vpop.permute.xlu1 %1353 }
 0x379   : > { %1733 = vperm.xlu1 %3198, %v3841_v36   ;;  %v4022_v37 = vpop.permute.xlu0 %1357 }
 0x37a   : > { %3200 = vset.pattern.permute.xlu0 %v4706_v40 }
 0x37b   : > { %1806 = vperm.xlu0 %3200, %v3805_v26  }
 0x37d   : > { %1741 = vperm.xlu1 %3198, %v3853_v39   ;;  %v4027_v43 = vpop.permute.xlu1 %1398 }
 0x37e   : > { %v4029_v46 = vpop.permute.xlu0 %1402 }
 0x37f   : > { %1818 = vperm.xlu0 %3200, %v3817_v29  }
 0x381   : > { %1749 = vperm.xlu1 %3198, %v3865_v42   ;;  %v4033_v47 = vpop.permute.xlu1 %1406 }
 0x382   : > { %v4035_v48 = vpop.permute.xlu0 %1414 }
 0x383   : > { %1826 = vperm.xlu0 %3200, %v3829_v33  }
 0x385   : > { %1757 = vperm.xlu1 %3198, %v3877_v45   ;;  %v4039_v49 = vpop.permute.xlu1 %1410 }
 0x386   : > { %v4041_v50 = vpop.permute.xlu0 %1422 }
 0x387   : > { %1834 = vperm.xlu0 %3200, %v3841_v36  }
 0x389   : > { %3199 = vset.pattern.permute.xlu1 %v4706_v40  ;;  %v4045_v51 = vpop.permute.xlu1 %1418 }
 0x38a   : > { %1802 = vperm.xlu1 %3199, %v3793_v22   ;;  %v4048_v52 = vpop.permute.xlu0 %1430 }
 0x38b   : > { %1846 = vperm.xlu0 %3200, %v3848_v38  }
 0x38d   : > { %v4051_v53 = vpop.permute.xlu1 %1426 }
 0x38e   : > { %1810 = vperm.xlu1 %3199, %v3788_v21   ;;  %v4054_v54 = vpop.permute.xlu0 %1438 }
 0x38f   : > { %4744 = vst [vmem:[#allocation26_spill] sm:$0xff] %v4054_v54  ;;  %1854 = vperm.xlu0 %3200, %v3860_v41  }
 0x391   : > { %v4057_v55 = vpop.permute.xlu1 %1434 }
 0x392   : > { %4745 = vst [vmem:[#allocation27_spill] sm:$0xff] %v4057_v55  ;;  %1814 = vperm.xlu1 %3199, %v3800_v25   ;;  %v4060_v58 = vpop.permute.xlu0 %1446 }
 0x393   : > { %4746 = vst [vmem:[#allocation28_spill] sm:$0xff] %v4060_v58  ;;  %3205 = vset.pattern.permute.xlu0 %v4708_v11  ;;  %v948_v11 = vlaneseq }
 0x394   : > { %1903 = vperm.xlu0 %3205, %v3793_v22  }
 0x395   : > { %v4064_v56 = vpop.permute.xlu1 %1442 }
 0x396   : > { %4747 = vst [vmem:[#allocation29_spill] sm:$0xff] %v4064_v56  ;;  %1822 = vperm.xlu1 %3199, %v3812_v28   ;;  %v4067_v40 = vpop.permute.xlu0 %1454 }
 0x397   : > { %4748 = vst [vmem:[#allocation30_spill] sm:$0xff] %v4067_v40 }
 0x398   : > { %1915 = vperm.xlu0 %3205, %v3800_v25   ;;  %v4753_v25 = vmov 7  }
 0x399   : > { %v4070_v54 = vpop.permute.xlu1 %1450 }
 0x39a   : > { %4749 = vst [vmem:[#allocation31_spill] sm:$0xff] %v4070_v54  ;;  %1830 = vperm.xlu1 %3199, %v3824_v32  }
 0x39b   : > { %v4073_v55 = vpop.permute.xlu0 %1499 }
 0x39c   : > { %4750 = vst [vmem:[#allocation32_spill] sm:$0xff] %v4073_v55  ;;  %1923 = vperm.xlu0 %3205, %v3812_v28   ;;  %v918_v28 = vstv %s917_s26 }
 0x39d   : > { %v4076_v58 = vpop.permute.xlu1 %1458  ;;  %vm919_vm1 = vcmp.eq.s32.totalorder %v918_v28, 1 }
 0x39e   : > { %4751 = vst [vmem:[#allocation33_spill] sm:$0xff] %v4076_v58  ;;  %1838 = vperm.xlu1 %3199, %v3836_v35   ;;  %v4091_v58 = vshrl.u32 %v948_v11, 7 }
 0x39f   : > { %v4079_v22 = vpop.permute.xlu0 %1511 }
 0x3a0   : > { %4752 = vst [vmem:[#allocation34_spill] sm:$0xff] %v4079_v22  ;;  %1931 = vperm.xlu0 %3205, %v3824_v32   ;;  %4756 = vst [vmem:[#allocation37_spill] sm:$0xff] %v4091_v58  ;;  %v921_v22 = vrot.slane %v3778_v0, 1 }
 0x3a2   : > { %3201 = vset.pattern.permute.xlu1 %v4753_v25  ;;  %v4085_v40 = vpop.permute.xlu1 %1503 }
 0x3a3   : > { %4754 = vst [vmem:[#allocation35_spill] sm:$0xff] %v4085_v40  ;;  %1907 = vperm.xlu1 %3201, %v3805_v26   ;;  %v4088_v55 = vpop.permute.xlu0 %1519  ;;  %v950_v26 = vsub.s32 0, %v4091_v58 }
 0x3a4   : > { %4755 = vst [vmem:[#allocation36_spill] sm:$0xff] %v4088_v55  ;;  %1943 = vperm.xlu0 %3205, %v3853_v39   ;;  %v923_v55 = vsel %vm919_vm1, %v3778_v0, %v921_v22 }
 0x3a6   : > { %v4094_v54 = vpop.permute.xlu1 %1507 }
 0x3a7   : > { %4757 = vst [vmem:[#allocation38_spill] sm:$0xff] %v4094_v54  ;;  %1911 = vperm.xlu1 %3201, %v3788_v21   ;;  %v4097_v32 = vpop.permute.xlu0 %1527  ;;  %v4108_v54 = vrot.slane %v923_v55, %v950_v26 }
 0x3a8   : > { %4758 = vst [vmem:[#allocation39_spill] sm:$0xff] %v4097_v32  ;;  %1951 = vperm.xlu0 %3205, %v3865_v42  }
 0x3aa   : > { %v4102_v40 = vpop.permute.xlu1 %1515 }
 0x3ab   : > { %4759 = vst [vmem:[#allocation40_spill] sm:$0xff] %v4102_v40  ;;  %1919 = vperm.xlu1 %3201, %v3817_v29   ;;  %v4105_v11 = vpop.permute.xlu0 %1535 }
 0x3ac   : > { %4760 = vst [vmem:[#allocation41_spill] sm:$0xff] %v4105_v11  ;;  %1963 = vperm.xlu0 %3205, %v3872_v44  }
 0x3ae   : > { %v4110_v28 = vpop.permute.xlu1 %1523 }
 0x3af   : > { %4761 = vst [vmem:[#allocation42_spill] sm:$0xff] %v4110_v28  ;;  %v2909_v21 = vpop.f32.mrb[0].mxu0  ;;  %1927 = vperm.xlu1 %3201, %v3829_v33   ;;  %v4113_v32 = vpop.permute.xlu0 %1543  ;;  %v4764_v28 = vmov 6  }
 0x3b0   : > { %4762 = vst [vmem:[#allocation43_spill] sm:$0xff] %v4113_v32  ;;  %v1043_v58 = vadd.f32 %v2909_v21, %v4108_v54  ;;  %v1034_v22 = vpop.f32.mrb[1].mxu0  ;;  %v4132_v21 = vld [vmem:[%s4690_s2] sm:$0xff] }
 0x3b1   : > { %v1035_v0 = vadd.f32 %v1034_v22, %v4108_v54  ;;  %v2910_v40 = vpop.f32.mrb[2].mxu0  ;;  %4766 = vst [vmem:[#allocation46_spill] sm:$0xff] %v4132_v21 }
 0x3b2   : > { %v1046_v29 = vadd.f32 %v2910_v40, %v4108_v54  ;;  %v1037_v11 = vpop.f32.mrb[3].mxu0  ;;  %v4118_v56 = vpop.permute.xlu1 %1531  ;;  %v4120_v55 = vmax.f32 %v1043_v58, 0.0 }
 0x3b3   : > { %4763 = vst [vmem:[#allocation44_spill] sm:$0xff] %v4118_v56  ;;  %v1038_v26 = vadd.f32 %v1037_v11, %v4108_v54  ;;  %3202 = vset.pattern.permute.xlu1 %v4764_v28  ;;  %v4124_v33 = vpop.permute.xlu0 %1551  ;;  %v4126_v32 = vmax.f32 %v1035_v0, 0.0 }
 0x3b4   : > { %4765 = vst [vmem:[#allocation45_spill] sm:$0xff] %v4124_v33  ;;  %1842 = vperm.xlu1 %3202, %v3853_v39   ;;  %v4134_v40 = vmax.f32 %v1046_v29, 0.0  ;;  %v4142_v11 = vadd.f32 %v3929_v57, %v4120_v55  ;;  %v4146_v0 = vadd.f32 %v3984_v14, %v4120_v55 }
 0x3b5   : > { %v4136_v22 = vmax.f32 %v1038_v26, 0.0  ;;  %v4158_v26 = vadd.f32 %v4033_v47, %v4120_v55  ;;  %v4162_v57 = vadd.f32 %v3931_v59, %v4126_v32  ;;  %v4166_v14 = vadd.f32 %v3980_v13, %v4126_v32 }
 0x3b6   : > { %v4138_v58 = vpop.permute.xlu1 %1539  ;;  %v4172_v29 = vadd.f32 %v4027_v43, %v4126_v32  ;;  %v4176_v47 = vadd.f32 %v3935_v60, %v4134_v40  ;;  %v4183_v13 = vadd.f32 %v3986_v15, %v4134_v40 }
 0x3b7   : > { %4767 = vst [vmem:[#allocation47_spill] sm:$0xff] %v4136_v22  ;;  %4768 = vst [vmem:[#allocation48_spill] sm:$0xff] %v4138_v58  ;;  %v2913_v39 = vpop.f32.mrb[4].mxu0  ;;  %v4148_v33 = vpop.permute.xlu0 %1559  ;;  %v4152_v56 = vpack.c.bf16 %v4136_v22, %v4126_v32 }
 0x3b8   : > { %4769 = vst [vmem:[#allocation49_spill] sm:$0xff] %v4148_v33  ;;  %4771 = vst [vmem:[#allocation51_spill] sm:$0xff] %v4158_v26  ;;  %v1059_v33 = vadd.f32 %v2913_v39, %v4108_v54  ;;  %v1050_v58 = vpop.f32.mrb[5].mxu0  ;;  %3203 = vset.pattern.permute.xlu1 %v4753_v25  ;;  %v4187_v39 = vadd.f32 %v4039_v49, %v4134_v40  ;;  %v4204_v49 = vpack.c.bf16 %v4134_v40, %v4120_v55 }
 0x3b9   : > { %4770 = vst [vmem:[#allocation50_spill] sm:$0xff] %v4152_v56  ;;  %4772 = vst [vmem:[#allocation52_spill] sm:$0xff] %v4172_v29  ;;  %v1051_v59 = vadd.f32 %v1050_v58, %v4108_v54  ;;  %v2914_v26 = vpop.f32.mrb[6].mxu0  ;;  %2924 = vmatpush3.bf16.msra.mxu1 %v4152_v56  ;;  %1935 = vperm.xlu1 %3203, %v3841_v36   ;;  %v4776_v58 = vmov 0.0   ;;  %v4197_v36 = vadd.f32 %v3937_v61, %v4136_v22 }
 0x3ba   : > { %4773 = vst [vmem:[#allocation53_spill] sm:$0xff] %v4187_v39  ;;  %v4189_v43 = vmax.f32 %v1059_v33, 0.0  ;;  %v1062_v60 = vadd.f32 %v2914_v26, %v4108_v54  ;;  %v1053_v29 = vpop.f32.mrb[7].mxu0  ;;  %v4192_v21 = vpop.permute.xlu1 %1547  ;;  %2925 = vmatprep.subr.bf16.mxu1 %v4776_v58  ;;  %4777 = vst [vmem:[#allocation56_spill] sm:$0xff] %v4204_v49  ;;  %v4208_v33 = vadd.f32 %v3978_v12, %v4136_v22 }
 0x3bb   : > { %4775 = vst [vmem:[#allocation55_spill] sm:$0xff] %v4192_v21  ;;  %v4199_v56 = vmax.f32 %v1051_v59, 0.0  ;;  %v1054_v15 = vadd.f32 %v1053_v29, %v4108_v54  ;;  %v4212_v26 = vadd.f32 %v4029_v46, %v4136_v22 }
 0x3bc   : > { %4774 = vst [vmem:[#allocation54_spill] sm:$0xff] %v4189_v43  ;;  %v4216_v61 = vadd.f32 %v3949_v2, %v4189_v43  ;;  %v4218_v59 = vmax.f32 %v1062_v60, 0.0  ;;  %v1605_v21 = vpop.permute.xlu0 %1604  ;;  %v4222_v29 = vadd.f32 %v3995_v18, %v4189_v43  ;;  %v4226_v39 = vadd.f32 %v4041_v50, %v4189_v43 }
 0x3bd   : > { %4778 = vst [vmem:[#allocation57_spill] sm:$0xff] %v4212_v26  ;;  %v4230_v12 = vadd.f32 %v3943_v63, %v4199_v56  ;;  %v4232_v46 = vmax.f32 %v1054_v15, 0.0  ;;  %2926 = vmatpush3.bf16.msra.mxu1 %v4204_v49  ;;  %1939 = vperm.xlu1 %3203, %v3836_v35   ;;  %v4238_v2 = vadd.f32 %v3990_v16, %v4199_v56 }
 0x3be   : > { %4779 = vst [vmem:[#allocation58_spill] sm:$0xff] %v4226_v39  ;;  %v4242_v18 = vadd.f32 %v4035_v48, %v4199_v56  ;;  %v4246_v50 = vadd.f32 %v3946_v1, %v4218_v59  ;;  %v4250_v63 = vadd.f32 %v3998_v19, %v4218_v59  ;;  %v4252_v60 = vpop.permute.xlu1 %1555  ;;  %2927 = vmatprep.subr.bf16.mxu1 %v4776_v58 }
 0x3bf   : > { %4781 = vst [vmem:[#allocation60_spill] sm:$0xff] %v4252_v60  ;;  %v4257_v35 = vadd.f32 %v4051_v53, %v4218_v59  ;;  %v1264_v16 = vadd.f32 %v3940_v62, %v4232_v46  ;;  %v4263_v48 = vadd.f32 %v3992_v17, %v4232_v46  ;;  %v2917_v1 = vpop.f32.mrb[8].mxu0  ;;  %v4267_v19 = vpack.c.bf16 %v4232_v46, %v4199_v56 }
 0x3c0   : > { %4780 = vst [vmem:[#allocation59_spill] sm:$0xff] %v4242_v18  ;;  %v4270_v15 = vadd.f32 %v1605_v21, %v4136_v22  ;;  %v1075_v49 = vadd.f32 %v2917_v1, %v4108_v54  ;;  %v1617_v60 = vpop.permute.xlu0 %1616  ;;  %v1066_v53 = vpop.f32.mrb[9].mxu0  ;;  %v1275_v62 = vmax.f32 %v4162_v57, %v4230_v12  ;;  %v1277_v21 = vmax.f32 %v4142_v11, %v4216_v61 }
 0x3c1   : > { %4782 = vst [vmem:[#allocation61_spill] sm:$0xff] %v4257_v35  ;;  %4783 = vst [vmem:[#allocation62_spill] sm:$0xff] %v4267_v19  ;;  %v4275_v35 = vpack.c.bf16 %v4218_v59, %v4189_v43  ;;  %v1667_v17 = vadd.f32 %v1617_v60, %v4199_v56  ;;  %v1067_v39 = vadd.f32 %v1066_v53, %v4108_v54  ;;  %v2918_v26 = vpop.f32.mrb[10].mxu0  ;;  %2928 = vmatpush3.bf16.msra.mxu1 %v4267_v19 }
 0x3c2   : > { %1947 = vperm.xlu1 %3203, %v3848_v38   ;;  %v4285_v1 = vmax.f32 %v1075_v49, 0.0  ;;  %v1078_v22 = vadd.f32 %v2918_v26, %v4108_v54  ;;  %v1069_v18 = vpop.f32.mrb[11].mxu0  ;;  %2929 = vmatprep.subr.bf16.mxu1 %v4776_v58  ;;  %v1276_v57 = vmax.f32 %v4197_v36, %v1264_v16  ;;  %v1278_v12 = vmax.f32 %v4176_v47, %v4246_v50 }
 0x3c3   : > { %4784 = vst [vmem:[#allocation63_spill] sm:$0xff] %v4275_v35  ;;  %v4292_v60 = vmax.f32 %v1067_v39, 0.0  ;;  %v1070_v53 = vadd.f32 %v1069_v18, %v4108_v54  ;;  %v1601_v38 = vpop.permute.xlu1 %1600  ;;  %v1376_v11 = vmax.f32 %v4166_v14, %v4238_v2 }
 0x3c4   : > { %v1269_v26 = vadd.f32 %v3961_v6, %v4285_v1  ;;  %v4301_v61 = vmax.f32 %v1078_v22, 0.0  ;;  %v1663_v36 = vadd.f32 %v1601_v38, %v4126_v32  ;;  %v1625_v16 = vpop.permute.xlu0 %1624  ;;  %v4308_v39 = vadd.f32 %v4007_v24, %v4285_v1 }
 0x3c5   : > { %v1267_v14 = vadd.f32 %v3955_v4, %v4292_v60  ;;  %v1368_v2 = vadd.f32 %v4001_v20, %v4292_v60  ;;  %v4314_v18 = vmax.f32 %v1070_v53, 0.0  ;;  %2930 = vmatpush3.bf16.msra.mxu1 %v4275_v35  ;;  %v1669_v50 = vadd.f32 %v1625_v16, %v4189_v43 }
 0x3c6   : > { %3204 = vset.pattern.permute.xlu1 %v4764_v28  ;;  %v1270_v6 = vadd.f32 %v3958_v5, %v4301_v61  ;;  %v1679_v22 = vmax.f32 %v1663_v36, %v1667_v17  ;;  %2931 = vmatprep.subr.bf16.mxu1 %v4776_v58  ;;  %v4325_v4 = vadd.f32 %v4010_v27, %v4301_v61 }
 0x3c7   : > { %1850 = vperm.xlu1 %3204, %v3865_v42   ;;  %v1268_v20 = vadd.f32 %v3952_v3, %v4314_v18  ;;  %v1369_v24 = vadd.f32 %v4004_v23, %v4314_v18  ;;  %v2921_v28 = vpop.f32.mrb[12].mxu0  ;;  %v1609_v53 = vpop.permute.xlu1 %1608  ;;  %v4333_v5 = vpack.c.bf16 %v4314_v18, %v4292_v60  ;;  %v4339_v27 = vpack.c.bf16 %v4301_v61, %v4285_v1 }
 0x3c8   : > { %v1091_v42 = vadd.f32 %v2921_v28, %v4108_v54  ;;  %v1665_v17 = vadd.f32 %v1609_v53, %v4120_v55  ;;  %v1633_v38 = vpop.permute.xlu0 %1632  ;;  %v1082_v36 = vpop.f32.mrb[13].mxu0  ;;  %v1279_v3 = vmax.f32 %v1275_v62, %v1267_v14  ;;  %v1281_v35 = vmax.f32 %v1277_v21, %v1269_v26 }
 0x3c9   : > { %4785 = vst [vmem:[#allocation64_spill] sm:$0xff] %v4333_v5  ;;  %4786 = vst [vmem:[#allocation65_spill] sm:$0xff] %v4339_v27  ;;  %v1671_v16 = vadd.f32 %v1633_v38, %v4292_v60  ;;  %v1083_v23 = vadd.f32 %v1082_v36, %v4108_v54  ;;  %v2922_v47 = vpop.f32.mrb[14].mxu0  ;;  %2932 = vmatpush3.bf16.msra.mxu1 %v4333_v5  ;;  %v1280_v49 = vmax.f32 %v1276_v57, %v1268_v20 }
 0x3ca   : > { %v4344_v19 = vmax.f32 %v1091_v42, 0.0  ;;  %v1681_v28 = vmax.f32 %v1665_v17, %v1669_v50  ;;  %v1094_v53 = vadd.f32 %v2922_v47, %v4108_v54  ;;  %v1085_v43 = vpop.f32.mrb[15].mxu0  ;;  %2933 = vmatprep.subr.bf16.mxu1 %v4776_v58  ;;  %v1282_v62 = vmax.f32 %v1278_v12, %v1270_v6 }
 0x3cb   : > { %1858 = vperm.xlu1 %3204, %v3877_v45   ;;  %v4349_v14 = vmax.f32 %v1679_v22, %v1671_v16  ;;  %v4351_v38 = vmax.f32 %v1083_v23, 0.0  ;;  %v1086_v36 = vadd.f32 %v1085_v43, %v4108_v54  ;;  %v1613_v5 = vpop.permute.xlu1 %1612  ;;  %v1379_v21 = vmax.f32 %v4183_v13, %v4250_v63 }
 0x3cc   : > { %4787 = vst [vmem:[#allocation66_spill] sm:$0xff] %v4344_v19  ;;  %v4356_v57 = vmax.f32 %v1094_v53, 0.0  ;;  %v1641_v26 = vpop.permute.xlu0 %1640  ;;  %v1273_v47 = vadd.f32 %v3973_v10, %v4344_v19  ;;  %v1374_v50 = vadd.f32 %v4019_v34, %v4344_v19  ;;  %v1380_v12 = vmax.f32 %v1376_v11, %v1368_v2 }
 0x3cd   : > { %v4362_v6 = vmax.f32 %v1086_v36, 0.0  ;;  %v1673_v22 = vadd.f32 %v1641_v26, %v4285_v1  ;;  %2934 = vmatpush3.bf16.msra.mxu1 %v4339_v27  ;;  %v1271_v54 = vadd.f32 %v3967_v8, %v4351_v38  ;;  %v1372_v13 = vadd.f32 %v4013_v30, %v4351_v38 }
 0x3ce   : > { %2935 = vmatprep.subr.bf16.mxu1 %v4776_v58  ;;  %v4374_v10 = vpack.c.bf16 %v4356_v57, %v4344_v19  ;;  %v1274_v34 = vadd.f32 %v3970_v9, %v4356_v57  ;;  %v1285_v43 = vmax.f32 %v1281_v35, %v1273_v47  ;;  %v1375_v9 = vadd.f32 %v4022_v37, %v4356_v57  ;;  %v4792_v47 = vld [vmem:[#allocation27_spill] sm:$0xff] }
 0x3cf   : > { %1862 = vperm.xlu1 %3204, %v3872_v44   ;;  %v4378_v63 = vmax.f32 %v1681_v28, %v1673_v22  ;;  %v1621_v11 = vpop.permute.xlu1 %1620  ;;  %v4382_v8 = vpack.c.bf16 %v4362_v6, %v4351_v38  ;;  %v1272_v44 = vadd.f32 %v3964_v7, %v4362_v6  ;;  %v1283_v30 = vmax.f32 %v1279_v3, %v1271_v54  ;;  %v4793_v54 = vld [vmem:[#allocation26_spill] sm:$0xff] }
 0x3d0   : > { %4788 = vst [vmem:[#allocation67_spill] sm:$0xff] %v4374_v10  ;;  %v1668_v2 = vadd.f32 %v1621_v11, %v4232_v46  ;;  %v1649_v20 = vpop.permute.xlu0 %1648  ;;  %v1286_v42 = vmax.f32 %v1282_v62, %v1274_v34  ;;  %v1373_v17 = vadd.f32 %v4016_v31, %v4362_v6  ;;  %v4790_v7 = vmax.f32 %v4208_v33, %v4263_v48  ;;  %v4794_v34 = vld [vmem:[#allocation29_spill] sm:$0xff] }
 0x3d1   : > { %4789 = vst [vmem:[#allocation68_spill] sm:$0xff] %v4382_v8  ;;  %v4392_v35 = vadd.f32 %v1649_v20, %v4351_v38  ;;  %2936 = vmatpush3.bf16.msra.mxu1 %v4382_v8  ;;  %v1284_v16 = vmax.f32 %v1280_v49, %v1272_v44  ;;  %v4791_v23 = vmax.f32 %v4146_v0, %v4222_v29  ;;  %v4795_v44 = vld [vmem:[#allocation46_spill] sm:$0xff] }
 0x3d2   : > { %v1381_v3 = vmax.f32 %v4790_v7, %v1369_v24  ;;  %v1680_v31 = vmax.f32 %v4270_v15, %v1668_v2  ;;  %2937 = vmatprep.subr.bf16.mxu1 %v4776_v58  ;;  %v1288_v37 = vmax.f32 %v1285_v43, %v1286_v42  ;;  %v1383_v53 = vmax.f32 %v1379_v21, %v4325_v4  ;;  %v4797_v2 = vld [vmem:[#allocation28_spill] sm:$0xff]  ;;  %v4800_v7 = vld [vmem:[#allocation59_spill] sm:$0xff] }
 0x3d3   : > { %v1382_v28 = vmax.f32 %v4791_v23, %v4308_v39  ;;  %3206 = vset.pattern.permute.xlu1 %v4753_v25  ;;  %v1687_v49 = vmax.f32 %v4349_v14, %v4392_v35  ;;  %v1629_v33 = vpop.permute.xlu1 %1628  ;;  %v1287_v48 = vmax.f32 %v1283_v30, %v1284_v16  ;;  %v1384_v24 = vmax.f32 %v1380_v12, %v1372_v13 }
 0x3d4   : > { %1955 = vperm.xlu1 %3206, %v3860_v41   ;;  %v1385_v62 = vmax.f32 %v1381_v3, %v1373_v17  ;;  %v1666_v0 = vadd.f32 %v1613_v5, %v4134_v40  ;;  %v1670_v29 = vadd.f32 %v1629_v33, %v4218_v59  ;;  %v1657_v15 = vpop.permute.xlu0 %1656  ;;  %v1387_v39 = vmax.f32 %v1383_v53, %v1375_v9  ;;  %v4799_v9 = vld [vmem:[#allocation30_spill] sm:$0xff]  ;;  %v4801_v3 = vld [vmem:[#allocation52_spill] sm:$0xff]  ;;  %v4804_v33 = vld [vmem:[#allocation51_spill] sm:$0xff] }
 0x3d5   : > { %v1386_v25 = vmax.f32 %v1382_v28, %v1374_v50  ;;  %v1466_v58 = vadd.f32 %v4045_v51, %v4232_v46  ;;  %v4414_v4 = vadd.f32 %v1657_v15, %v4344_v19  ;;  %2938 = vmatpush3.bf16.msra.mxu1 %v4374_v10  ;;  %v1289_v41 = vmax.f32 %v1287_v48, %v1288_v37  ;;  %v4802_v28 = vld [vmem:[#allocation57_spill] sm:$0xff]  ;;  %v4803_v53 = vld [vmem:[#allocation58_spill] sm:$0xff] }
 0x3d6   : > { %v1388_v36 = vmax.f32 %v1384_v24, %v1385_v62  ;;  %v1682_v21 = vmax.f32 %v1666_v0, %v1670_v29  ;;  %v1469_v5 = vadd.f32 %v4048_v52, %v4292_v60  ;;  %v1470_v12 = vadd.f32 %v4792_v47, %v4314_v18  ;;  %v4805_v0 = vld [vmem:[#allocation33_spill] sm:$0xff] }
 0x3d7   : > { %v1389_v26 = vmax.f32 %v1386_v25, %v1387_v39  ;;  %v1637_v51 = vpop.permute.xlu1 %1636  ;;  %v1290_v22 = vrot.slane %v1289_v41, 4  ;;  %v1471_v13 = vadd.f32 %v4793_v54, %v4285_v1  ;;  %v1472_v43 = vadd.f32 %v4794_v34, %v4301_v61  ;;  %v4806_v15 = vld [vmem:[#allocation61_spill] sm:$0xff] }
 0x3d8   : > { %1959 = vperm.xlu1 %3206, %v3877_v45   ;;  %v1672_v11 = vadd.f32 %v1637_v51, %v4314_v18  ;;  %v4796_v52 = vpack.c.bf16 %v4795_v44, %v4795_v44  ;;  %v1473_v20 = vadd.f32 %v4797_v2, %v4351_v38  ;;  %v4798_v45 = vld [vmem:[#allocation31_spill] sm:$0xff]  ;;  %v1475_v16 = vadd.f32 %v4799_v9, %v4344_v19  ;;  %v4807_v25 = vld [vmem:[#allocation53_spill] sm:$0xff] }
 0x3d9   : > { %v1390_v30 = vmax.f32 %v1388_v36, %v1389_v26  ;;  %v1474_v42 = vadd.f32 %v4798_v45, %v4362_v6  ;;  %v4436_v17 = vpop.permute.xlu0 %1701  ;;  %v1477_v23 = vmax.f32 %v4801_v3, %v4800_v7  ;;  %v1478_v37 = vmax.f32 %v4802_v28, %v1466_v58  ;;  %v4808_v7 = vld [vmem:[#allocation32_spill] sm:$0xff] }
 0x3da   : > { %2940 = vmatmul.mubr.bf16.vlgmr.msra.gmra.mrb[0].mxu1 %v4796_v52  ;;  %v1479_v48 = vmax.f32 %v4804_v33, %v4803_v53  ;;  %v1684_v24 = vmax.f32 %v1680_v31, %v1672_v11  ;;  %v1476_v29 = vadd.f32 %v4805_v0, %v4356_v57  ;;  %v1480_v39 = vmax.f32 %v4807_v25, %v4806_v15  ;;  %v4814_v33 = vld [vmem:[#allocation36_spill] sm:$0xff]  ;;  %v4816_v0 = vld [vmem:[#allocation42_spill] sm:$0xff]  ;;  %v4817_v15 = vld [vmem:[#allocation39_spill] sm:$0xff] }
 0x3db   : > { %v1391_v62 = vrot.slane %v1390_v30, 4  ;;  %v1645_v36 = vpop.permute.xlu1 %1644  ;;  %v1481_v26 = vmax.f32 %v1477_v23, %v1469_v5  ;;  %v1482_v47 = vmax.f32 %v1478_v37, %v1470_v12  ;;  %v1291_v34 = vmax.f32 %v1289_v41, %v1290_v22  ;;  %v4809_v5 = vld [vmem:[#allocation47_spill] sm:$0xff]  ;;  %v4811_v23 = vld [vmem:[#allocation38_spill] sm:$0xff] }
 0x3dc   : > { %v1483_v51 = vmax.f32 %v1479_v48, %v1471_v13  ;;  %v1674_v54 = vadd.f32 %v1645_v36, %v4301_v61  ;;  %v1484_v44 = vmax.f32 %v1480_v39, %v1472_v43  ;;  %v1562_v3 = vadd.f32 %v4808_v7, %v4126_v32  ;;  %v4810_v12 = vld [vmem:[#allocation35_spill] sm:$0xff]  ;;  %v4812_v22 = vld [vmem:[#allocation34_spill] sm:$0xff] }
 0x3dd   : > { %v4450_v58 = vpop.permute.xlu0 %1713  ;;  %v1392_v52 = vmax.f32 %v1390_v30, %v1391_v62  ;;  %v1485_v2 = vmax.f32 %v1481_v26, %v1473_v20  ;;  %v1486_v31 = vmax.f32 %v1482_v47, %v1474_v42  ;;  %v1563_v13 = vadd.f32 %v4810_v12, %v4809_v5  ;;  %v4815_v62 = vld [vmem:[#allocation54_spill] sm:$0xff]  ;;  %v4818_v47 = vld [vmem:[#allocation44_spill] sm:$0xff] }
 0x3de   : > { %v1487_v11 = vmax.f32 %v1483_v51, %v1475_v16  ;;  %v1686_v45 = vmax.f32 %v1682_v21, %v1674_v54  ;;  %v1488_v9 = vmax.f32 %v1484_v44, %v1476_v29  ;;  %v1564_v41 = vadd.f32 %v4811_v23, %v4120_v55  ;;  %v4813_v21 = vld [vmem:[#allocation40_spill] sm:$0xff]  ;;  %v4819_v54 = vld [vmem:[#allocation41_spill] sm:$0xff] }
 0x3df   : > { %v1653_v28 = vpop.permute.xlu1 %1652  ;;  %v1489_v53 = vmax.f32 %v1485_v2, %v1486_v31  ;;  %v1565_v43 = vadd.f32 %v4812_v22, %v4134_v40  ;;  %v1292_v20 = vrot.slane %v1291_v34, 2  ;;  %v1566_v16 = vadd.f32 %v4813_v21, %v4199_v56  ;;  %v4820_v31 = vld [vmem:[#allocation48_spill] sm:$0xff]  ;;  %v4825_v21 = vld [vmem:[#allocation49_spill] sm:$0xff] }
 0x3e0   : > { %v1676_v30 = vadd.f32 %v1653_v28, %v4362_v6  ;;  %v1490_v42 = vmax.f32 %v1487_v11, %v1488_v9  ;;  %v1393_v37 = vrot.slane %v1392_v52, 2  ;;  %v1567_v48 = vadd.f32 %v4814_v33, %v4232_v46  ;;  %v4821_v9 = vld [vmem:[#allocation43_spill] sm:$0xff] }
 0x3e1   : > { %v1568_v29 = vadd.f32 %v4816_v0, %v4815_v62  ;;  %v1569_v25 = vadd.f32 %v4817_v15, %v4218_v59  ;;  %v1722_v36 = vpop.permute.xlu0 %1721  ;;  %v1570_v51 = vadd.f32 %v4818_v47, %v4292_v60  ;;  %v1571_v44 = vadd.f32 %v4819_v54, %v4314_v18  ;;  %v4822_v28 = vld [vmem:[#allocation55_spill] sm:$0xff] }
 0x3e2   : > { %v1688_v39 = vmax.f32 %v1684_v24, %v1676_v30  ;;  %v1491_v26 = vmax.f32 %v1489_v53, %v1490_v42  ;;  %v1572_v11 = vadd.f32 %v4820_v31, %v4285_v1  ;;  %v1573_v7 = vadd.f32 %v4821_v9, %v4301_v61  ;;  %v4823_v24 = vld [vmem:[#allocation45_spill] sm:$0xff]  ;;  %v4824_v30 = vld [vmem:[#allocation60_spill] sm:$0xff] }
 0x3e3   : > { %v1661_v2 = vpop.permute.xlu1 %1660  ;;  %v1574_v12 = vadd.f32 %v4822_v28, %v4351_v38  ;;  %v1575_v23 = vadd.f32 %v4823_v24, %v4362_v6  ;;  %v1576_v42 = vadd.f32 %v4824_v30, %v4344_v19  ;;  %v1577_v33 = vadd.f32 %v4825_v21, %v4356_v57 }
 0x3e4   : > { %v1691_v53 = vmax.f32 %v1687_v49, %v1688_v39  ;;  %v1492_v22 = vrot.slane %v1491_v26, 4  ;;  %v1578_v0 = vmax.f32 %v1562_v3, %v1566_v16  ;;  %v1579_v15 = vmax.f32 %v1563_v13, %v1567_v48 }
 0x3e5   : > { %v1580_v47 = vmax.f32 %v1564_v41, %v1568_v29  ;;  %v1581_v54 = vmax.f32 %v1565_v43, %v1569_v25  ;;  %v1678_v9 = vadd.f32 %v1661_v2, %v4356_v57  ;;  %v1293_v14 = vmax.f32 %v1291_v34, %v1292_v20  ;;  %v1730_v8 = vpop.permute.xlu0 %1729 }
 0x3e6   : > { %v1493_v31 = vmax.f32 %v1491_v26, %v1492_v22  ;;  %v1582_v28 = vmax.f32 %v1578_v0, %v1570_v51  ;;  %v1583_v24 = vmax.f32 %v1579_v15, %v1571_v44  ;;  %v1394_v35 = vmax.f32 %v1392_v52, %v1393_v37 }
 0x3e7   : > { %v1584_v50 = vmax.f32 %v1580_v47, %v1572_v11  ;;  %v1585_v10 = vmax.f32 %v1581_v54, %v1573_v7  ;;  %v1690_v39 = vmax.f32 %v1686_v45, %v1678_v9  ;;  %v1769_v13 = vadd.f32 %v1722_v36, %v4232_v46 }
 0x3e8   : > { %v1494_v49 = vrot.slane %v1493_v31, 2  ;;  %v1706_v30 = vpop.permute.xlu1 %1705  ;;  %v1586_v27 = vmax.f32 %v1582_v28, %v1574_v12  ;;  %v1587_v19 = vmax.f32 %v1583_v24, %v1575_v23  ;;  %v4826_v41 = vmax.f32 %v4378_v63, %v4414_v4 }
 0x3e9   : > { %v1588_v21 = vmax.f32 %v1584_v50, %v1576_v42  ;;  %v1589_v3 = vmax.f32 %v1585_v10, %v1577_v33  ;;  %v1765_v16 = vadd.f32 %v1706_v30, %v4809_v5  ;;  %v1294_v37 = vrot.slane %v1293_v14, 1  ;;  %v1738_v50 = vpop.permute.xlu0 %1737 }
 0x3ea   : > { %v1692_v43 = vmax.f32 %v4826_v41, %v1690_v39  ;;  %v1590_v48 = vmax.f32 %v1586_v27, %v1587_v19  ;;  %v1495_v34 = vmax.f32 %v1493_v31, %v1494_v49  ;;  %v1395_v25 = vrot.slane %v1394_v35, 1 }
 0x3eb   : > { %v1591_v29 = vmax.f32 %v1588_v21, %v1589_v3  ;;  %v1781_v20 = vmax.f32 %v1765_v16, %v1769_v13  ;;  %v1764_v36 = vadd.f32 %v4436_v17, %v4126_v32  ;;  %v1295_v2 = vmax.f32 %v1293_v14, %v1294_v37 }
 0x3ec   : > { %v1693_v52 = vmax.f32 %v1691_v53, %v1692_v43  ;;  %v1710_v45 = vpop.permute.xlu1 %1709  ;;  %v1496_v44 = vrot.slane %v1495_v34, 1  ;;  %v1396_v11 = vmax.f32 %v1394_v35, %v1395_v25  ;;  %v1771_v43 = vadd.f32 %v1730_v8, %v4218_v59 }
 0x3ed   : > { %v1592_v26 = vmax.f32 %v1590_v48, %v1591_v29  ;;  %v1746_v42 = vpop.permute.xlu0 %1745  ;;  %v1766_v17 = vadd.f32 %v1710_v45, %v4120_v55  ;;  %v1773_v16 = vadd.f32 %v1738_v50, %v4314_v18  ;;  %v1767_v45 = vadd.f32 %v4450_v58, %v4134_v40 }
 0x3ee   : > { %v1694_v51 = vrot.slane %v1693_v52, 4  ;;  %v1497_v53 = vmax.f32 %v1495_v34, %v1496_v44  ;;  %v2004_v15 = vsel %vm2003_vm2, %v1295_v2, %v1396_v11  ;;  %v1775_v25 = vadd.f32 %v1746_v42, %v4301_v61 }
 0x3ef   : > { %v1593_v10 = vrot.slane %v1592_v26, 4  ;;  %v1785_v37 = vmax.f32 %v1781_v20, %v1773_v16 }
 0x3f0   : > { %v1695_v63 = vmax.f32 %v1693_v52, %v1694_v51  ;;  %v1718_v4 = vpop.permute.xlu1 %1717  ;;  %v2006_v24 = vsel %vm2005_vm3, %v2004_v15, %v1497_v53  ;;  %v1783_v51 = vmax.f32 %v1767_v45, %v1771_v43 }
 0x3f1   : > { %v1594_v19 = vmax.f32 %v1592_v26, %v1593_v10  ;;  %v1768_v27 = vadd.f32 %v1718_v4, %v4199_v56  ;;  %v1754_v39 = vpop.permute.xlu0 %1753  ;;  %v4827_v4 = vld [vmem:[#allocation66_spill] sm:$0xff] }
 0x3f2   : > { %v1696_v7 = vrot.slane %v1695_v63, 2  ;;  %v1777_v48 = vadd.f32 %v1754_v39, %v4362_v6  ;;  %v1787_v50 = vmax.f32 %v1783_v51, %v1775_v25 }
 0x3f3   : > { %v1595_v12 = vrot.slane %v1594_v19, 2  ;;  %v1780_v23 = vmax.f32 %v1764_v36, %v1768_v27 }
 0x3f4   : > { %v1697_v22 = vmax.f32 %v1695_v63, %v1696_v7  ;;  %v1726_v33 = vpop.permute.xlu1 %1725  ;;  %v1789_v10 = vmax.f32 %v1785_v37, %v1777_v48 }
 0x3f5   : > { %v1596_v0 = vmax.f32 %v1594_v19, %v1595_v12  ;;  %v1770_v47 = vadd.f32 %v1726_v33, %v4815_v62  ;;  %v1762_v34 = vpop.permute.xlu0 %1761 }
 0x3f6   : > { %v1698_v54 = vrot.slane %v1697_v22, 1  ;;  %v1779_v36 = vadd.f32 %v1762_v34, %v4356_v57 }
 0x3f7   : > { %v1597_v31 = vrot.slane %v1596_v0, 1  ;;  %v1782_v9 = vmax.f32 %v1766_v17, %v1770_v47 }
 0x3f8   : > { %v1699_v28 = vmax.f32 %v1697_v22, %v1698_v54  ;;  %v1734_v14 = vpop.permute.xlu1 %1733  ;;  %v1791_v11 = vmax.f32 %v1787_v50, %v1779_v36 }
 0x3f9   : > { %v1598_v35 = vmax.f32 %v1596_v0, %v1597_v31  ;;  %v1772_v49 = vadd.f32 %v1734_v14, %v4292_v60 }
 0x3fa   : > { %v1807_v20 = vpop.permute.xlu0 %1806 }
 0x3fb   : > { %v2008_v30 = vsel %vm2007_vm4, %v2006_v24, %v1598_v35  ;;  %v1784_v21 = vmax.f32 %v1780_v23, %v1772_v49 }
 0x3fc   : > { %v2010_v3 = vsel %vm2009_vm5, %v2008_v30, %v1699_v28  ;;  %v1742_v13 = vpop.permute.xlu1 %1741 }
 0x3fd   : > { %v1774_v41 = vadd.f32 %v1742_v13, %v4285_v1 }
 0x3fe   : > { %v1819_v33 = vpop.permute.xlu0 %1818 }
 0x3ff   : > { %v1786_v29 = vmax.f32 %v1782_v9, %v1774_v41  ;;  %v1869_v25 = vadd.f32 %v1819_v33, %v4199_v56 }
 0x400   : > { %v1750_v52 = vpop.permute.xlu1 %1749 }
 0x401   : > { %v1776_v26 = vadd.f32 %v1750_v52, %v4351_v38 }
 0x402   : > { %v1827_v54 = vpop.permute.xlu0 %1826 }
 0x403   : > { %v1788_v8 = vmax.f32 %v1784_v21, %v1776_v26 }
 0x404   : > { %v1758_v44 = vpop.permute.xlu1 %1757 }
 0x405   : > { %v1792_v63 = vmax.f32 %v1788_v8, %v1789_v10  ;;  %v1778_v2 = vadd.f32 %v1758_v44, %v4827_v4  ;;  %v1866_v10 = vadd.f32 %v1807_v20, %v4809_v5 }
 0x406   : > { %v1835_v24 = vpop.permute.xlu0 %1834 }
 0x407   : > { %v1790_v19 = vmax.f32 %v1786_v29, %v1778_v2 }
 0x409   : > { %v1793_v27 = vmax.f32 %v1790_v19, %v1791_v11  ;;  %v1803_v7 = vpop.permute.xlu1 %1802  ;;  %v1873_v19 = vadd.f32 %v1835_v24, %v4292_v60 }
 0x40a   : > { %v1847_v35 = vpop.permute.xlu0 %1846 }
 0x40b   : > { %v1794_v58 = vmax.f32 %v1792_v63, %v1793_v27  ;;  %v1871_v63 = vadd.f32 %v1827_v54, %v4815_v62 }
 0x40d   : > { %v1795_v12 = vrot.slane %v1794_v58, 4  ;;  %v1811_v23 = vpop.permute.xlu1 %1810 }
 0x40e   : > { %v1855_v39 = vpop.permute.xlu0 %1854  ;;  %v1867_v8 = vadd.f32 %v1811_v23, %v4120_v55 }
 0x40f   : > { %v1796_v53 = vmax.f32 %v1794_v58, %v1795_v12  ;;  %v1876_v12 = vadd.f32 %v1847_v35, %v4301_v61 }
 0x410   : > { %v1883_v20 = vmax.f32 %v1867_v8, %v1871_v63 }
 0x411   : > { %v1797_v22 = vrot.slane %v1796_v53, 2  ;;  %v1815_v42 = vpop.permute.xlu1 %1814 }
 0x412   : > { %v1868_v51 = vadd.f32 %v1815_v42, %v4134_v40  ;;  %v1878_v42 = vadd.f32 %v1855_v39, %v4362_v6 }
 0x413   : > { %v1798_v0 = vmax.f32 %v1796_v53, %v1797_v22  ;;  %v1904_v13 = vpop.permute.xlu0 %1903 }
 0x414   : > { %v1966_v33 = vadd.f32 %v1904_v13, %v4126_v32 }
 0x415   : > { %v1799_v15 = vrot.slane %v1798_v0, 1  ;;  %v1823_v17 = vpop.permute.xlu1 %1822 }
 0x416   : > { %v1870_v26 = vadd.f32 %v1823_v17, %v4232_v46 }
 0x417   : > { %v1800_v47 = vmax.f32 %v1798_v0, %v1799_v15  ;;  %v1916_v43 = vpop.permute.xlu0 %1915 }
 0x418   : > { %v1882_v27 = vmax.f32 %v1866_v10, %v1870_v26  ;;  %v1969_v24 = vadd.f32 %v1916_v43, %v4134_v40 }
 0x419   : > { %v4510_v31 = vsel %vm2011_vm6, %v2010_v3, %v1800_v47  ;;  %v1831_v9 = vpop.permute.xlu1 %1830  ;;  %v1865_v3 = vadd.f32 %v1803_v7, %v4126_v32 }
 0x41a   : > { %v1872_v45 = vadd.f32 %v1831_v9, %v4218_v59 }
 0x41b   : > { %v1924_v48 = vpop.permute.xlu0 %1923  ;;  %v1881_v36 = vmax.f32 %v1865_v3, %v1869_v25 }
 0x41c   : > { %v1884_v2 = vmax.f32 %v1868_v51, %v1872_v45  ;;  %v1971_v39 = vadd.f32 %v1924_v48, %v4232_v46 }
 0x41d   : > { %v1839_v28 = vpop.permute.xlu1 %1838  ;;  %v1885_v22 = vmax.f32 %v1881_v36, %v1873_v19 }
 0x41e   : > { %v1874_v44 = vadd.f32 %v1839_v28, %v4314_v18  ;;  %v1888_v15 = vmax.f32 %v1884_v2, %v1876_v12 }
 0x41f   : > { %v1932_v52 = vpop.permute.xlu0 %1931 }
 0x420   : > { %v1886_v53 = vmax.f32 %v1882_v27, %v1874_v44  ;;  %v1973_v17 = vadd.f32 %v1932_v52, %v4218_v59 }
 0x422   : > { %v1908_v14 = vpop.permute.xlu1 %1907  ;;  %v1890_v32 = vmax.f32 %v1886_v53, %v1878_v42  ;;  %v1985_v40 = vmax.f32 %v1969_v24, %v1973_v17  ;;  %v4830_v17 = vld [vmem:[#allocation62_spill] sm:$0xff] (!%p2694_p12)  ;;  %v2033_v24 = vld [vmem:[#allocation4] sm:$0xff] (!%p2694_p12) }
 0x423   : > { %v1944_v50 = vpop.permute.xlu0 %1943  ;;  %v1967_v35 = vadd.f32 %v1908_v14, %v4809_v5  ;;  %2027 = vst [vmem:[#allocation3 + $0x10] sm:$0xff] (!%p2694_p12), %v4830_v17 }
 0x424   : > { %v1976_v26 = vadd.f32 %v1944_v50, %v4285_v1 }
 0x426   : > { %v1912_v49 = vpop.permute.xlu1 %1911 }
 0x427   : > { %v1952_v47 = vpop.permute.xlu0 %1951  ;;  %v1968_v59 = vadd.f32 %v1912_v49, %v4120_v55 }
 0x42a   : > { %v1920_v30 = vpop.permute.xlu1 %1919 }
 0x42e   : > { %v1928_v21 = vpop.permute.xlu1 %1927 }
 0x42f   : > { %v1972_v3 = vadd.f32 %v1928_v21, %v4815_v62  ;;  %v1964_v21 = vpop.permute.xlu0 %1963 }
 0x431   : > { %v1984_v62 = vmax.f32 %v1968_v59, %v1972_v3 }
 0x433   : > { %v1843_v41 = vpop.permute.xlu1 %1842  ;;  %v1988_v10 = vmax.f32 %v1984_v62, %v1976_v26 }
 0x434   : > { %v1875_v7 = vadd.f32 %v1843_v41, %v4285_v1  ;;  %v1970_v41 = vadd.f32 %v1920_v30, %v4199_v56  ;;  %v1983_v56 = vmax.f32 %v1967_v35, %v1971_v39  ;;  %v2036_v35 = vld [vmem:[#allocation5] sm:$0xff] (!%p2694_p12) }
 0x436   : > { %v1887_v54 = vmax.f32 %v1883_v20, %v1875_v7  ;;  %v1982_v30 = vmax.f32 %v1966_v33, %v1970_v41 }
 0x438   : > { %v1936_v16 = vpop.permute.xlu1 %1935 }
 0x439   : > { %v1974_v52 = vadd.f32 %v1936_v16, %v4292_v60 }
 0x43b   : > { %v1986_v55 = vmax.f32 %v1982_v30, %v1974_v52 }
 0x43c   : > { %v1940_v29 = vpop.permute.xlu1 %1939 }
 0x441   : > { %v1948_v34 = vpop.permute.xlu1 %1947 }
 0x442   : > { %v1977_v25 = vadd.f32 %v1948_v34, %v4301_v61 }
 0x444   : > { %v1989_v60 = vmax.f32 %v1985_v40, %v1977_v25 }
 0x446   : > { %v1851_v37 = vpop.permute.xlu1 %1850 }
 0x447   : > { %v1877_v58 = vadd.f32 %v1851_v37, %v4351_v38  ;;  %v1975_v37 = vadd.f32 %v1940_v29, %v4314_v18  ;;  %v1978_v18 = vadd.f32 %v1952_v47, %v4351_v38  ;;  %v1981_v29 = vadd.f32 %v1964_v21, %v4356_v57  ;;  %v4832_v47 = vld [vmem:[#allocation64_spill] sm:$0xff] (!%p2694_p12) }
 0x448   : > { %2029 = vst [vmem:[#allocation3 + $0x20] sm:$0xff] (!%p2694_p12), %v4832_v47 }
 0x449   : > { %v1889_v9 = vmax.f32 %v1885_v22, %v1877_v58  ;;  %v1987_v49 = vmax.f32 %v1983_v56, %v1975_v37  ;;  %v1990_v8 = vmax.f32 %v1986_v55, %v1978_v18 }
 0x44a   : > { %v1859_v11 = vpop.permute.xlu1 %1858 }
 0x44b   : > { %v1879_v23 = vadd.f32 %v1859_v11, %v4827_v4  ;;  %v1893_v43 = vmax.f32 %v1889_v9, %v1890_v32  ;;  %v4834_v9 = vld [vmem:[#allocation68_spill] sm:$0xff] (!%p2694_p12) }
 0x44c   : > { %2031 = vst [vmem:[#allocation3 + $0x30] sm:$0xff] (!%p2694_p12), %v4834_v9 }
 0x44d   : > { %v1891_v13 = vmax.f32 %v1887_v54, %v1879_v23  ;;  %v4833_v54 = vld [vmem:[#allocation65_spill] sm:$0xff] (!%p2694_p12) }
 0x44e   : > { %v1863_v0 = vpop.permute.xlu1 %1862  ;;  %2030 = vst [vmem:[#allocation3 + $0x28] sm:$0xff] (!%p2694_p12), %v4833_v54 }
 0x44f   : > { %v1880_v28 = vadd.f32 %v1863_v0, %v4356_v57  ;;  %v4828_v0 = vld [vmem:[#allocation50_spill] sm:$0xff] (!%p2694_p12) }
 0x450   : > { %2025 = vst [vmem:[#allocation3] sm:$0xff] (!%p2694_p12), %v4828_v0 }
 0x451   : > { %v1892_v45 = vmax.f32 %v1888_v15, %v1880_v28  ;;  %v4829_v15 = vld [vmem:[#allocation56_spill] sm:$0xff] (!%p2694_p12)  ;;  %v4835_v28 = vld [vmem:[#allocation67_spill] sm:$0xff] (!%p2694_p12) }
 0x452   : > { %2026 = vst [vmem:[#allocation3 + $0x8] sm:$0xff] (!%p2694_p12), %v4829_v15  ;;  %2032 = vst [vmem:[#allocation3 + $0x38] sm:$0xff] (!%p2694_p12), %v4835_v28 }
 0x453   : > { %v1894_v5 = vmax.f32 %v1891_v13, %v1892_v45  ;;  %v1956_v14 = vpop.permute.xlu1 %1955 }
 0x454   : > { %v1979_v46 = vadd.f32 %v1956_v14, %v4362_v6  ;;  %v1993_v6 = vmax.f32 %v1989_v60, %v1981_v29 }
 0x455   : > { %v1895_v48 = vmax.f32 %v1893_v43, %v1894_v5 }
 0x456   : > { %v1991_v34 = vmax.f32 %v1987_v49, %v1979_v46 }
 0x457   : > { %v1896_v16 = vrot.slane %v1895_v48, 4  ;;  %v1960_v61 = vpop.permute.xlu1 %1959 }
 0x458   : > { %v1980_v51 = vadd.f32 %v1960_v61, %v4827_v4  ;;  %v1994_v2 = vmax.f32 %v1990_v8, %v1991_v34 }
 0x459   : > { %v1897_v36 = vmax.f32 %v1895_v48, %v1896_v16 }
 0x45a   : > { %v1992_v44 = vmax.f32 %v1988_v10, %v1980_v51 }
 0x45b   : > { %v1898_v63 = vrot.slane %v1897_v36, 2 }
 0x45c   : > { %v1995_v1 = vmax.f32 %v1992_v44, %v1993_v6 }
 0x45d   : > { %v1899_v50 = vmax.f32 %v1897_v36, %v1898_v63 }
 0x45e   : > { %v1996_v11 = vmax.f32 %v1994_v2, %v1995_v1 }
 0x45f   : > { %v1900_v19 = vrot.slane %v1899_v50, 1 }
 0x460   : > { %v1997_v38 = vrot.slane %v1996_v11, 4 }
 0x461   : > { %v1901_v27 = vmax.f32 %v1899_v50, %v1900_v19 }
 0x462   : > { %v1998_v7 = vmax.f32 %v1996_v11, %v1997_v38 }
 0x463   : > { %v2014_v57 = vsel %vm2013_vm7, %v4510_v31, %v1901_v27  ;;  %v4831_v31 = vld [vmem:[#allocation63_spill] sm:$0xff] (!%p2694_p12) }
 0x464   : > { %v1999_v58 = vrot.slane %v1998_v7, 2  ;;  %2028 = vst [vmem:[#allocation3 + $0x18] sm:$0xff] (!%p2694_p12), %v4831_v31 }
 0x466   : > { %v2000_v12 = vmax.f32 %v1998_v7, %v1999_v58 }
 0x468   : > { %v2001_v4 = vrot.slane %v2000_v12, 1 }
 0x46a   : > { %v2002_v20 = vmax.f32 %v2000_v12, %v2001_v4 }
 0x46c   : > { %v2016_v53 = vsel %vm2015_vm8, %v2014_v57, %v2002_v20 }
 0x46d   : > { %v2034_v41 = vmax.f32 (!%p2694_p12), %v2033_v24, %v2016_v53 }
 0x46f   : > { %2035 = vst [vmem:[#allocation4] sm:$0xff] (!%p2694_p12), %v2034_v41 }
 0x4aa   : > { %2019 = sbr.rel (%p2694_p12) target bundleno = 1201 (0x4b1), region = 96 }
 0x4ad   : > { %v1157_v22 = vpop.f32.mrb[0].mxu1 }
 0x4ae   : > { %v2941_v23 = vpop.f32.mrb[1].mxu1  ;;  %v2037_v3 = vadd.f32 (!%p2694_p12), %v2036_v35, %v1157_v22 }
 0x4af   : > { %v1160_v42 = vpop.f32.mrb[2].mxu1 }
 0x4b0   : > { %v2942_v33 = vpop.f32.mrb[3].mxu1  ;;  %2038 = vst [vmem:[#allocation5] sm:$0xff] (!%p2694_p12), %v2037_v3 }
 0x4b1 PF: > { %p2695_p13 = scmp.ne.s32.totalorder %s3479_s13, 1 }
 0x4b2   : > { %v2042_v39 = vld [vmem:[#allocation6] sm:$0xff] (!%p2695_p13)  ;;  %v2045_v32 = vld [vmem:[#allocation7] sm:$0xff] (!%p2695_p13) }
 0x4b3   : > { %2041 = sbr.rel (%p2695_p13) target bundleno = 1210 (0x4ba), region = 100  ;;  %v2043_v13 = vmax.f32 (!%p2695_p13), %v2042_v39, %v2016_v53  ;;  %v2046_v45 = vadd.f32 (!%p2695_p13), %v2045_v32, %v1157_v22 }
 0x4b5   : > { %2044 = vst [vmem:[#allocation6] sm:$0xff] (!%p2695_p13), %v2043_v13  ;;  %2047 = vst [vmem:[#allocation7] sm:$0xff] (!%p2695_p13), %v2046_v45 }
 0x4ba PF: > { %2049 = sbr.rel (!%p727_p3) target bundleno = 2211 (0x8a3), region = 104  ;;  %v3215_v59 = vld [vmem:[%s4694_s6 + $0x40] sm:$0xff] (%p727_p3)   ;;  %v3509_v52 = vmov (%p727_p3), 0.0   ;;  %v3217_v25 = vld [vmem:[%s4694_s6 + $0x48] sm:$0xff] (%p727_p3)   ;;  %vm3510_vm9 = vmmov (%p727_p3), 0   ;;  %v3219_v43 = vld [vmem:[%s4694_s6 + $0x50] sm:$0xff] (%p727_p3)  }
 0x4bb   : > { %2943 = vmatprep.subr.bf16.mxu0 (%p727_p3), %v3509_v52  ;;  %2963 = vmatprep.subr.bf16.mxu1 (%p727_p3), %v3509_v52  ;;  %v3216_v37 = vld [vmem:[%s4694_s6] sm:$0xff] (%p727_p3)   ;;  %v3218_v40 = vld [vmem:[%s4694_s6 + $0x8] sm:$0xff] (%p727_p3)   ;;  %v3220_v5 = vld [vmem:[%s4694_s6 + $0x10] sm:$0xff] (%p727_p3)  }
 0x4bc   : > { %2944 = vmatpush3.bf16.msra.mxu0 (%p727_p3), %v3215_v59  ;;  %2959 = vmatprep.mubr.msk.bf16.mxu0 (%p727_p3), %vm3510_vm9, %v3509_v52  ;;  %v3221_v14 = vld [vmem:[%s4694_s6 + $0x58] sm:$0xff] (%p727_p3)   ;;  %v3223_v30 = vld [vmem:[%s4694_s6 + $0x60] sm:$0xff] (%p727_p3)   ;;  %v3225_v46 = vld [vmem:[%s4694_s6 + $0x68] sm:$0xff] (%p727_p3)  }
 0x4bd   : > { %2964 = vmatpush3.bf16.msra.mxu1 (%p727_p3), %v3216_v37  ;;  %2945 = vmatprep.subr.bf16.mxu0 (%p727_p3), %v3509_v52  ;;  %v3222_v56 = vld [vmem:[%s4694_s6 + $0x18] sm:$0xff] (%p727_p3)   ;;  %v3224_v62 = vld [vmem:[%s4694_s6 + $0x20] sm:$0xff] (%p727_p3)   ;;  %v3226_v21 = vld [vmem:[%s4694_s6 + $0x28] sm:$0xff] (%p727_p3)  }
 0x4be   : > { %2965 = vmatprep.subr.bf16.mxu1 (%p727_p3), %v3509_v52  ;;  %2979 = vmatprep.mubr.msk.bf16.mxu1 (%p727_p3), %vm3510_vm9, %v3509_v52  ;;  %v2055_v48 = vld [vmem:[#allocation5] sm:$0xff] (%p727_p3)  ;;  %v2057_v26 = vld [vmem:[#allocation7] sm:$0xff] (%p727_p3)  ;;  %v2050_v55 = vld [vmem:[#allocation4] sm:$0xff] (%p727_p3) }
 0x4bf   : > { %v2052_v49 = vld [vmem:[#allocation6] sm:$0xff] (%p727_p3)  ;;  %v2056_v18 = vmax.f32 (%p727_p3), %v2055_v48, 0.0  ;;  %v2058_v16 = vmax.f32 (%p727_p3), %v2057_v26, 0.0  ;;  %v2051_v61 = vmax.f32 (%p727_p3), %v2050_v55, 0.0  ;;  %v3229_v51 = vld [vmem:[%s4694_s6 + $0x78] sm:$0xff] (%p727_p3)   ;;  %v3231_v63 = vld [vmem:[#allocation16] sm:$0xff] (%p727_p3)  }
 0x4c0   : > { %2946 = vmatpush3.bf16.msra.mxu0 (%p727_p3), %v3217_v25  ;;  %v3227_v60 = vld [vmem:[%s4694_s6 + $0x70] sm:$0xff] (%p727_p3)   ;;  %v2053_v29 = vmax.f32 (%p727_p3), %v2052_v49, 0.0  ;;  %v3230_v10 = vld [vmem:[%s4694_s6 + $0x38] sm:$0xff] (%p727_p3)   ;;  %v3232_v2 = vld [vmem:[#allocation16 + $0x8] sm:$0xff] (%p727_p3)  }
 0x4c1   : > { %2966 = vmatpush3.bf16.msra.mxu1 %v3218_v40  ;;  %2947 = vmatprep.subr.bf16.mxu0 %v3509_v52  ;;  %v3228_v34 = vld [vmem:[%s4694_s6 + $0x30] sm:$0xff]   ;;  %v2059_v36 = vadd.f32 %v2058_v16, %v2056_v18  ;;  %v3234_v50 = vld [vmem:[#allocation16 + $0x18] sm:$0xff]   ;;  %v3235_v11 = vld [vmem:[#allocation16 + $0x20] sm:$0xff]  }
 0x4c2   : > { %2967 = vmatprep.subr.bf16.mxu1 %v3509_v52  ;;  %v2054_v8 = vadd.f32 %v2053_v29, %v2051_v61  ;;  %v3233_v1 = vld [vmem:[#allocation16 + $0x10] sm:$0xff]   ;;  %v3236_v19 = vld [vmem:[#allocation16 + $0x28] sm:$0xff]   ;;  %v3238_v27 = vld [vmem:[#allocation16 + $0x38] sm:$0xff]  }
 0x4c3   : > { %v2077_v6 = vpack.c.bf16 %v2059_v36, %v2059_v36  ;;  %v3237_v38 = vld [vmem:[#allocation16 + $0x30] sm:$0xff]   ;;  %v3239_v7 = vld [vmem:[#allocation17] sm:$0xff]   ;;  %v3240_v57 = vld [vmem:[#allocation17 + $0x8] sm:$0xff]  }
 0x4c4   : > { %2948 = vmatpush3.bf16.msra.mxu0 %v3219_v43  ;;  %v2060_v44 = vpack.c.bf16 %v2054_v8, %v2054_v8  ;;  %v3241_v58 = vld [vmem:[#allocation17 + $0x10] sm:$0xff]   ;;  %v3242_v12 = vld [vmem:[#allocation17 + $0x18] sm:$0xff]   ;;  %v3243_v4 = vld [vmem:[#allocation17 + $0x20] sm:$0xff]  }
 0x4c5   : > { %2968 = vmatpush3.bf16.msra.mxu1 %v3220_v5  ;;  %2949 = vmatprep.subr.bf16.mxu0 %v3509_v52  ;;  %v3244_v20 = vld [vmem:[#allocation17 + $0x28] sm:$0xff]   ;;  %v3245_v3 = vld [vmem:[#allocation17 + $0x30] sm:$0xff]   ;;  %v3246_v39 = vld [vmem:[#allocation17 + $0x38] sm:$0xff]  }
 0x4c6   : > { %2969 = vmatprep.subr.bf16.mxu1 %v3509_v52  ;;  %v4836_v53 = vld [vmem:[#allocation37_spill] sm:$0xff] }
 0x4c7   : > { %v2272_v22 = vsub.s32 2, %v4836_v53  ;;  %v4837_v42 = vld [vmem:[#allocation25_spill] sm:$0xff]  ;;  %v2295_v32 = vsub.s32 3, %v4836_v53 }
 0x4c8   : > { %2950 = vmatpush3.bf16.msra.mxu0 %v3221_v14  ;;  %v2405_v14 = vsub.s32 4, %v4836_v53 }
 0x4c9   : > { %2970 = vmatpush3.bf16.msra.mxu1 %v3222_v56  ;;  %2951 = vmatprep.subr.bf16.mxu0 %v3509_v52  ;;  %v2273_v33 = vrot.slane %v4837_v42, %v2272_v22  ;;  %v2296_v13 = vrot.slane %v4837_v42, %v2295_v32 }
 0x4ca   : > { %2971 = vmatprep.subr.bf16.mxu1 %v3509_v52  ;;  %v2406_v56 = vrot.slane %v4837_v42, %v2405_v14 }
 0x4cc   : > { %2952 = vmatpush3.bf16.msra.mxu0 %v3223_v30 }
 0x4cd   : > { %2972 = vmatpush3.bf16.msra.mxu1 %v3224_v62  ;;  %2953 = vmatprep.subr.bf16.mxu0 %v3509_v52 }
 0x4ce   : > { %2973 = vmatprep.subr.bf16.mxu1 %v3509_v52 }
 0x4d0   : > { %2954 = vmatpush3.bf16.msra.mxu0 %v3225_v46 }
 0x4d1   : > { %2974 = vmatpush3.bf16.msra.mxu1 %v3226_v21  ;;  %2955 = vmatprep.subr.bf16.mxu0 %v3509_v52 }
 0x4d2   : > { %2975 = vmatprep.subr.bf16.mxu1 %v3509_v52 }
 0x4d4   : > { %2956 = vmatpush3.bf16.msra.mxu0 %v3227_v60 }
 0x4d5   : > { %2976 = vmatpush3.bf16.msra.mxu1 %v3228_v34  ;;  %2957 = vmatprep.subr.bf16.mxu0 %v3509_v52 }
 0x4d6   : > { %2977 = vmatprep.subr.bf16.mxu1 %v3509_v52 }
 0x4d8   : > { %2958 = vmatpush3.bf16.msra.mxu0 %v3229_v51 }
 0x4d9   : > { %2978 = vmatpush3.bf16.msra.mxu1 %v3230_v10  ;;  %2983 = vmatprep.subr.bf16.mxu0 %v3509_v52 }
 0x4da   : > { %3003 = vmatprep.subr.bf16.mxu1 %v3509_v52 }
 0x4db   : > { %2960 = vmatmul.mubr.bf16.vlgmr.msra.gmra.mrb[0].mxu0 %v2077_v6 }
 0x4dc   : > { %2980 = vmatmul.mubr.bf16.vlgmr.msra.gmra.mrb[0].mxu1 %v2060_v44  ;;  %2984 = vmatpush3.bf16.msra.mxu0 %v3231_v63 }
 0x4dd   : > { %2985 = vmatprep.subr.bf16.mxu0 %v3509_v52  ;;  %2999 = vmatprep.mubr.msk.bf16.mxu0 %vm3510_vm9, %v3509_v52 }
 0x4de   : > { %3019 = vmatprep.mubr.msk.bf16.mxu1 %vm3510_vm9, %v3509_v52  ;;  %3004 = vmatpush3.bf16.msra.mxu1 %v3239_v7 }
 0x4df   : > { %3005 = vmatprep.subr.bf16.mxu1 %v3509_v52 }
 0x4e0   : > { %2986 = vmatpush3.bf16.msra.mxu0 %v3232_v2 }
 0x4e1   : > { %2987 = vmatprep.subr.bf16.mxu0 %v3509_v52 }
 0x4e2   : > { %3006 = vmatpush3.bf16.msra.mxu1 %v3240_v57 }
 0x4e3   : > { %3007 = vmatprep.subr.bf16.mxu1 %v3509_v52 }
 0x4e4   : > { %2988 = vmatpush3.bf16.msra.mxu0 %v3233_v1 }
 0x4e5   : > { %2989 = vmatprep.subr.bf16.mxu0 %v3509_v52 }
 0x4e6   : > { %3008 = vmatpush3.bf16.msra.mxu1 %v3241_v58 }
 0x4e7   : > { %3009 = vmatprep.subr.bf16.mxu1 %v3509_v52 }
 0x4e8   : > { %2990 = vmatpush3.bf16.msra.mxu0 %v3234_v50 }
 0x4e9   : > { %2991 = vmatprep.subr.bf16.mxu0 %v3509_v52 }
 0x4ea   : > { %3010 = vmatpush3.bf16.msra.mxu1 %v3242_v12 }
 0x4eb   : > { %3011 = vmatprep.subr.bf16.mxu1 %v3509_v52 }
 0x4ec   : > { %2992 = vmatpush3.bf16.msra.mxu0 %v3235_v11 }
 0x4ed   : > { %2993 = vmatprep.subr.bf16.mxu0 %v3509_v52 }
 0x4ee   : > { %3012 = vmatpush3.bf16.msra.mxu1 %v3243_v4 }
 0x4ef   : > { %3013 = vmatprep.subr.bf16.mxu1 %v3509_v52 }
 0x4f0   : > { %2994 = vmatpush3.bf16.msra.mxu0 %v3236_v19 }
 0x4f1   : > { %2995 = vmatprep.subr.bf16.mxu0 %v3509_v52 }
 0x4f2   : > { %3014 = vmatpush3.bf16.msra.mxu1 %v3244_v20 }
 0x4f3   : > { %3015 = vmatprep.subr.bf16.mxu1 %v3509_v52 }
 0x4f4   : > { %2996 = vmatpush3.bf16.msra.mxu0 %v3237_v38 }
 0x4f5   : > { %2997 = vmatprep.subr.bf16.mxu0 %v3509_v52 }
 0x4f6   : > { %3016 = vmatpush3.bf16.msra.mxu1 %v3245_v3 }
 0x4f7   : > { %3017 = vmatprep.subr.bf16.mxu1 %v3509_v52 }
 0x4f8   : > { %2998 = vmatpush3.bf16.msra.mxu0 %v3238_v27 }
 0x4fa   : > { %3018 = vmatpush3.bf16.msra.mxu1 %v3246_v39 }
 0x5ae   : > { %v2176_v23 = vpop.f32.mrb[0].mxu0 }
 0x5af   : > { %v2264_v0 = vpop.f32.mrb[0].mxu1  ;;  %v2961_v15 = vpop.f32.mrb[1].mxu0 }
 0x5b0   : > { %v2265_v17 = vadd.f32 %v2264_v0, %v2176_v23  ;;  %v2981_v31 = vpop.f32.mrb[1].mxu1  ;;  %v2179_v47 = vpop.f32.mrb[2].mxu0 }
 0x5b1   : > { %v2267_v54 = vpop.f32.mrb[2].mxu1  ;;  %v2962_v9 = vpop.f32.mrb[3].mxu0 }
 0x5b2   : > { %v2274_v28 = vadd.f32 %v2273_v33, %v2265_v17  ;;  %v2982_v24 = vpop.f32.mrb[3].mxu1 }
 0x5b4   : > { %v2275_v35 = vmax.f32 %v2274_v28, 0.0 }
 0x5b6   : > { %v2276_v41 = vpack.c.bf16 %v2275_v35, %v2275_v35 }
 0x5b8   : > { %3000 = vmatmul.mubr.bf16.vlgmr.msra.gmra.mrb[4].mxu0 %v2276_v41 }
 0x68b   : > { %v2379_v45 = vpop.f32.mrb[4].mxu0 }
 0x68c   : > { %v2380_v59 = vadd.f32 %v2379_v45, %v2296_v13  ;;  %v3001_v37 = vpop.f32.mrb[5].mxu0 }
 0x68d   : > { %v2382_v25 = vpop.f32.mrb[6].mxu0 }
 0x68e   : > { %v2385_v40 = vmax.f32 %v2380_v59, 0.0  ;;  %v3002_v43 = vpop.f32.mrb[7].mxu0 }
 0x690   : > { %v2386_v5 = vpack.c.bf16 %v2385_v40, %v2385_v40 }
 0x692   : > { %3020 = vmatmul.mubr.bf16.vlgmr.msra.gmra.mrb[4].mxu1 %v2386_v5 }
 0x765   : > { %v2489_v30 = vpop.f32.mrb[4].mxu1 }
 0x766   : > { %v2490_v52 = vadd.f32 %v2489_v30, %v2406_v56  ;;  %v3021_v62 = vpop.f32.mrb[5].mxu1 }
 0x767   : > { %v2492_v46 = vpop.f32.mrb[6].mxu1 }
 0x768   : > { %2495 = vmax.xlane.f32.xlu0 %v2490_v52  ;;  %v3022_v21 = vpop.f32.mrb[7].mxu1 }
 0x7f5   : > { %v2496_v48 = vpop.xlane.xlu0 %2495 }
 0x7f6   : > { %v2497_v26 = vsub.f32 %v2490_v52, %v2496_v48 }
 0x7f8   : > { %v2498_v55 = vmul.f32 1.442695, %v2497_v26 }
 0x7fa   : > { %3247 = vpow2.f32 %v2498_v55 }
 0x804   : > { %v3248_v49 = vpop.eup %3247 }
 0x805   : > { %2500 = vadd.xlane.f32.xlu0 %v3248_v49 }
 0x892   : > { %v2501_v60 = vpop.xlane.xlu0 %2500 }
 0x893   : > { %3249 = vlog2.f32 %v2501_v60 }
 0x89d   : > { %v3250_v18 = vpop.eup %3249 }
 0x89e   : > { %v2503_v16 = vmul.f32 0.6931472, %v3250_v18 }
 0x8a0   : > { %v2504_v61 = vsub.f32 %v2497_v26, %v2503_v16 }
 0x8a2   : > { %2505 = vst [vmem:[#allocation19] sm:$0xff] %v2504_v61 }
 0x8a3 PF: > { %s4838_s11 = sadd.s32 4294967295, %s3487_s15   ;;  %s3511_s16 = smov [#allocation19]  }
 0x8a4   : > { %p4653_p0 = scmp.eq.s32.totalorder %s4838_s11, 1  ;;  %s2513_s22 = sshll.u32 %s3511_s16, 4  ;;  %s2514_s22 = int_to_ptr.vmem [resolvable:$true] %s2513_s22 }
 0x8a5   : > { %s3419_s24 = scalar_lea.vmem %s2514_s22, 128  ;;  %p3426_p8 = scmp.lt.s32.totalorder %s2514_s22, %s2514_s22 }
 0x8a6   : > { %p3420_p1 = scmp.ne.s32.totalorder %s2514_s22, %s3419_s24  ;;  %p3427_p9 = scmp.lt.s32.totalorder %s3419_s24, %s3419_s24 }
 0x8a8   : > { %p3421_p4 = pnand %p3420_p1, %p4653_p0  ;;  %p3428_p10 = por %p3427_p9, %p3426_p8 }
 0x8aa   : > { %p3422_p6 = pneg %p3421_p4 }
 0x8ac   : > { %p3429_p11 = pnand %p3428_p10, %p3422_p6 }
 0x8ae   : > { %3432 = shalt.err (!%p3429_p11)
}
 0x8af   : > { %s4840_s27 = sld [smem:[#allocation71_spill]] }
 0x8b5   : > { %s3433_s12 = scalar_lea.hbm %s4840_s27, 128 }
 0x8b6   : > { %p3434_p2 = scmp.ne.s32.totalorder %s4840_s27, %s3433_s12  ;;  %p3439_p3 = scmp.lt.u32.totalorder %s3433_s12, %s4840_s27 }
 0x8b8   : > { %p3435_p7 = pnand %p3434_p2, %p4653_p0 }
 0x8ba   : > { %p3436_p5 = pneg %p3435_p7 }
 0x8bc   : > { %p3441_p12 = pnand %p3439_p3, %p3436_p5 }
 0x8be   : > { %3444 = shalt.err (!%p3441_p12)
}
 0x8bf   : > { %3080 = dma.vmem_to_hbm [thread:$0]  (%p4653_p0), %s2514_s22, 128, %s4840_s27, [#allocation10]  }
 0x8c0   : > { %3474 = dma.done.wait (%p4653_p0), [#allocation10], 128  }
 0x8c1   : > { %3476 = vsyncadd (%p4653_p0), [#allocation10], 4294967168 }
 0x8c2 PF: > { %s25_s15 = sadd.s32 1, %s3487_s15   ;;  %s4841_s13 = smov %s3483_s14 }
 0x8c3   : > { %p22_p13 = scmp.ge.s32.totalorder %s25_s15, 4   ;;  %s4842_s14 = smov %s4844_s29 }
 0x8c5   :  { %24 = sbr.rel (!%p22_p13) target bundleno = 10 (0xa), region = 137 }
 0x8cc   :  { %2526 = vsyncpa [#allocation9], 1 }
 0x8cd   :  { %2528 = vsyncpa [#allocation9 + $0x1], 1 }
 0x8ce   :  { %2529 = vsyncpa [#allocation12], 1 }
 0x8cf   :  { %2530 = vsyncpa [#allocation15], 1 }
 0x8d0   :  { %2531 = vsyncpa [#allocation18], 1 }
 0x8d1   :  { %2532 = vsyncpa [#allocation10], 1 }
 0x8d2   :  { %2534 = vsyncpa [#allocation10 + $0x1], 1 }

</bundles_post_ra>
